<compile_context>
chip_gen: v6e
topology: v6e:2x2x1
jax: 0.10.0
libtpu: 0.0.40
codegen_flags: <defaults>
</compile_context>

<pallas_src>
import functools

import numpy as np
import jax
import jax.numpy as jnp
from jax import lax
from jax.experimental import pallas as pl
from jax.experimental.pallas import tpu as pltpu

K1, K2 = 7, 5          # conv kernel sizes
PAD1, PAD2 = 3, 2      # "same" paddings
BN_EPS = 1e-5
VMEM_LIMIT = 32 * 1024 * 1024   # portable across v5e / v6e / v7x


def _round_up(x, m):
    return ((x + m - 1) // m) * m


# ---------------------------------------------------------------------------
# Fused encoder + residue-projector + segment-sum kernel.
# One grid step processes nb residues:
#   conv1 (block-Toeplitz matmul) -> BN1(eval) -> ReLU
#   conv2 (block-Toeplitz matmul) -> BN2(eval) -> ReLU == lane-dense res_flat
#   -> residue projector: Linear -> BN(eval) -> ReLU -> Linear      [output 1]
#   -> one-hot(batch_idx)^T @ res_flat into resident (P, T*Cout)    [output 0]
# ---------------------------------------------------------------------------
def _encoder_kernel(bid_ref, x_ref, w1_ref, s1_ref, t1_ref, w2_ref, s2_ref,
                    t2_ref, wr1_ref, sr1_ref, tr1_ref, wr2_ref, br2_ref,
                    psum_ref, feat_ref, *, n_rows):
    nb = x_ref.shape[0]
    num_prot = psum_ref.shape[0]
    i = pl.program_id(0)

    @pl.when(i == 0)
    def _():
        psum_ref[...] = jnp.zeros_like(psum_ref)

    # conv1 + bias + BatchNorm1d(eval) + ReLU (Dropout is identity in eval).
    x = x_ref[...]                                              # (nb, T*Cin)
    h = jnp.dot(x, w1_ref[...], preferred_element_type=jnp.float32)
    h = jnp.maximum(h * s1_ref[...] + t1_ref[...], 0.0)        # (nb, T*H) f32

    # conv2 + bias + BatchNorm1d(eval) + ReLU.  The Toeplitz matmul directly
    # emits the flattened channels-last residue rep (nb, T*Cout) -- lane-dense.
    y = jnp.dot(h.astype(w2_ref.dtype), w2_ref[...],
                preferred_element_type=jnp.float32)
    res_flat = jnp.maximum(y * s2_ref[...] + t2_ref[...], 0.0)  # (nb, T*Cout)
    res_c = res_flat.astype(wr1_ref.dtype)

    # Fused residue projector MLP: Linear -> BN(eval) -> ReLU -> Linear.
    r = jnp.dot(res_c, wr1_ref[...], preferred_element_type=jnp.float32)
    r = jnp.maximum(r * sr1_ref[...] + tr1_ref[...], 0.0)
    r = jnp.dot(r.astype(wr2_ref.dtype), wr2_ref[...],
                preferred_element_type=jnp.float32) + br2_ref[...]
    feat_ref[...] = r.astype(feat_ref.dtype)

    # Fused scatter_mean numerator: per-protein segment sums of res_flat.
    # Rows past n_rows (partial last block) are masked with a select so garbage
    # (even NaN/Inf) never enters the reduction; OOB rows of feat_ref are
    # dropped by Pallas at writeback.
    row = lax.broadcasted_iota(jnp.int32, (nb, 1), 0) + i * nb
    valid = row < n_rows                                        # (nb, 1) bool
    pid = lax.broadcasted_iota(jnp.int32, (nb, num_prot), 1)
    onehot = jnp.where((bid_ref[...] == pid) & valid,
                       1.0, 0.0).astype(res_c.dtype)            # (nb, P)
    res_safe = jnp.where(valid, res_c, jnp.zeros_like(res_c))
    psum_ref[...] += lax.dot_general(
        onehot, res_safe, (((0,), (0,)), ((), ())),
        preferred_element_type=jnp.float32)


def encoder_forward(x_flat, bid, w1, s1, t1, w2, s2, t2,
                    wr1, sr1, tr1, wr2, br2, num_proteins, *, nb=512):
    """x_flat: (N, T*Cin) lane-dense; bid: (N, 1) int32."""
    N, d_in = x_flat.shape
    d_h = w1.shape[1]          # T * hidden_dim
    d_proj = w2.shape[1]       # T * output_dim
    r_in = wr1.shape[1]
    r_out = wr2.shape[1]

    nb = _round_up(max(8, nb), 8)
    if N <= nb:
        nb = N                 # single full block (always a legal BlockSpec)
    grid = (pl.cdiv(N, nb),)

    kernel = functools.partial(_encoder_kernel, n_rows=N)

    return pl.pallas_call(
        kernel,
        out_shape=(jax.ShapeDtypeStruct((num_proteins, d_proj), jnp.float32),
                   jax.ShapeDtypeStruct((N, r_out), jnp.float32)),
        grid=grid,
        in_specs=[
            pl.BlockSpec((nb, 1), lambda i: (i, 0)),          # batch_idx
            pl.BlockSpec((nb, d_in), lambda i: (i, 0)),       # lane-dense input
            pl.BlockSpec((d_in, d_h), lambda i: (0, 0)),      # Toeplitz conv1
            pl.BlockSpec((1, d_h), lambda i: (0, 0)),         # folded BN1 scale
            pl.BlockSpec((1, d_h), lambda i: (0, 0)),         # folded BN1 shift
            pl.BlockSpec((d_h, d_proj), lambda i: (0, 0)),    # Toeplitz conv2
            pl.BlockSpec((1, d_proj), lambda i: (0, 0)),
            pl.BlockSpec((1, d_proj), lambda i: (0, 0)),
            pl.BlockSpec((d_proj, r_in), lambda i: (0, 0)),   # residue projector
            pl.BlockSpec((1, r_in), lambda i: (0, 0)),
            pl.BlockSpec((1, r_in), lambda i: (0, 0)),
            pl.BlockSpec((r_in, r_out), lambda i: (0, 0)),
            pl.BlockSpec((1, r_out), lambda i: (0, 0)),
        ],
        out_specs=[
            # resident segment-sum accumulator across the whole grid
            pl.BlockSpec((num_proteins, d_proj), lambda i: (0, 0)),
            pl.BlockSpec((nb, r_out), lambda i: (i, 0)),
        ],
        compiler_params=pltpu.CompilerParams(
            # accumulator output revisits block 0 every step => "arbitrary"
            dimension_semantics=("arbitrary",),
            vmem_limit_bytes=VMEM_LIMIT),
    )(bid, x_flat, w1, s1, t1, w2, s2, t2, wr1, sr1, tr1, wr2, br2)


# ---------------------------------------------------------------------------
# MoBYMLP (num_layers=2) kernel: Linear -> BN1d(eval) -> ReLU -> Linear.
# Used for the protein projector (B = num_proteins, tiny -> single block).
# ---------------------------------------------------------------------------
def _mlp_kernel(x_ref, w1_ref, s1_ref, t1_ref, w2_ref, b2_ref, o_ref):
    h = jnp.dot(x_ref[...], w1_ref[...], preferred_element_type=jnp.float32)
    h = jnp.maximum(h * s1_ref[...] + t1_ref[...], 0.0)
    o = jnp.dot(h.astype(w2_ref.dtype), w2_ref[...],
                preferred_element_type=jnp.float32) + b2_ref[...]
    o_ref[...] = o.astype(o_ref.dtype)


def mlp_forward(x, w1, s1, t1, w2, b2, *, tb=512):
    B, d_in = x.shape
    d_hid = w1.shape[1]
    d_out = w2.shape[1]
    tb = B if B <= tb else _round_up(tb, 8)
    grid = (pl.cdiv(B, tb),)
    return pl.pallas_call(
        _mlp_kernel,
        out_shape=jax.ShapeDtypeStruct((B, d_out), jnp.float32),
        grid=grid,
        in_specs=[
            pl.BlockSpec((tb, d_in), lambda i: (i, 0)),
            pl.BlockSpec((d_in, d_hid), lambda i: (0, 0)),
            pl.BlockSpec((1, d_hid), lambda i: (0, 0)),
            pl.BlockSpec((1, d_hid), lambda i: (0, 0)),
            pl.BlockSpec((d_hid, d_out), lambda i: (0, 0)),
            pl.BlockSpec((1, d_out), lambda i: (0, 0)),
        ],
        out_specs=pl.BlockSpec((tb, d_out), lambda i: (i, 0)),
        compiler_params=pltpu.CompilerParams(
            dimension_semantics=("parallel",),
            vmem_limit_bytes=VMEM_LIMIT),
    )(x, w1, s1, t1, w2, b2)


# ---------------------------------------------------------------------------
# Parameter construction & host-side packing
# ---------------------------------------------------------------------------
def _bn_fold(bias, gamma, beta, mean, var):
    """Fold conv/linear bias + eval-mode BatchNorm into per-channel scale/shift."""
    s = gamma / jnp.sqrt(var + BN_EPS)
    t = beta + (bias - mean) * s
    return s.astype(jnp.float32), t.astype(jnp.float32)


def _toeplitz_pack(w, T, pad):
    """PyTorch Conv1d weight (Cout, Cin, K) -> block-Toeplitz (T*Cin, T*Cout)
    for stride-1 'same' conv, with the zero halo folded in as zero rows."""
    w = np.asarray(jax.device_get(w))
    c_out, c_in, k_sz = w.shape
    W = np.zeros((T * c_in, T * c_out), np.float32)
    for t_out in range(T):
        for k in range(k_sz):
            t_in = t_out + k - pad
            if 0 <= t_in < T:
                W[t_in * c_in:(t_in + 1) * c_in,
                  t_out * c_out:(t_out + 1) * c_out] = w[:, :, k].T
    return jnp.asarray(W)


def make_params(key, input_dim, hidden_dim, output_dim, temporal_dim,
                residue_inner_dim, residue_out_dim,
                protein_inner_dim, protein_out_dim):
    """Random parameters in PyTorch layouts (eval-mode BN stats included)."""
    keys = iter(jax.random.split(key, 32))

    def nrm(shape, scale=0.05):
        return (scale * jax.random.normal(next(keys), shape)).astype(jnp.float32)

    def bn(dim):
        return dict(gamma=1.0 + nrm((dim,)), beta=nrm((dim,)),
                    mean=nrm((dim,)), var=1.0 + jnp.abs(nrm((dim,))))

    def mlp(in_dim, inner_dim, out_dim):
        return dict(w1=nrm((inner_dim, in_dim)), b1=nrm((inner_dim,)),
                    bn=bn(inner_dim),
                    w2=nrm((out_dim, inner_dim)), b2=nrm((out_dim,)))

    proj_dim = temporal_dim * output_dim
    return dict(
        conv1_w=nrm((hidden_dim, input_dim, K1)), conv1_b=nrm((hidden_dim,)),
        bn1=bn(hidden_dim),
        conv2_w=nrm((output_dim, hidden_dim, K2)), conv2_b=nrm((output_dim,)),
        bn2=bn(output_dim),
        proj_residue=mlp(proj_dim, residue_inner_dim, residue_out_dim),
        proj_protein=mlp(proj_dim, protein_inner_dim, protein_out_dim),
    )


def pack_params(params, temporal_dim, compute_dtype=jnp.float32):
    """Pack PyTorch-layout params into kernel layouts: block-Toeplitz conv
    weights, BN+bias folded into per-column scale/shift tiled across T, and
    (in, out) projector weights. MXU operands are cast to compute_dtype;
    scale/shift/bias stay f32 (accumulation is always f32)."""
    T = temporal_dim
    cdt = compute_dtype
    s1, t1 = _bn_fold(params["conv1_b"], **params["bn1"])
    s2, t2 = _bn_fold(params["conv2_b"], **params["bn2"])
    pk = dict(
        w1=_toeplitz_pack(params["conv1_w"], T, PAD1).astype(cdt),
        s1=jnp.tile(s1, T)[None, :], t1=jnp.tile(t1, T)[None, :],
        w2=_toeplitz_pack(params["conv2_w"], T, PAD2).astype(cdt),
        s2=jnp.tile(s2, T)[None, :], t2=jnp.tile(t2, T)[None, :],
    )

    def pack_mlp(q, prefix, dtype):
        s, t = _bn_fold(q["b1"], **q["bn"])
        return {prefix + "w1": q["w1"].T.astype(dtype),
                prefix + "s1": s[None, :], prefix + "t1": t[None, :],
                prefix + "w2": q["w2"].T.astype(dtype),
                prefix + "b2": q["b2"][None, :].astype(jnp.float32)}

    pk.update(pack_mlp(params["proj_residue"], "r", cdt))
    pk.update(pack_mlp(params["proj_protein"], "p", jnp.float32))  # tiny; keep f32
    return pk


# ---------------------------------------------------------------------------
# Full forward
# ---------------------------------------------------------------------------
def _segment_counts(batch_idx, num_segments):
    return jax.ops.segment_sum(jnp.ones(batch_idx.shape, jnp.float32),
                               batch_idx, num_segments=num_segments)


def geom2vec_tematt_forward(packed, res_rep, batch_idx, num_proteins, *, nb=512):
    """Eval-mode forward. res_rep: (N, temporal_dim, input_dim); batch_idx: (N,)."""
    N, T, Cin = res_rep.shape
    # lane-dense, contiguous (free) reshape; cast to the packed compute dtype
    x_flat = res_rep.reshape(N, T * Cin).astype(packed["w1"].dtype)
    bid = batch_idx.reshape(N, 1).astype(jnp.int32)

    prot_sums, residue_feature = encoder_forward(
        x_flat, bid, packed["w1"], packed["s1"], packed["t1"],
        packed["w2"], packed["s2"], packed["t2"],
        packed["rw1"], packed["rs1"], packed["rt1"], packed["rw2"], packed["rb2"],
        num_proteins, nb=nb)

    # scatter_mean denominator (tiny, data-dependent) stays as plain JAX glue.
    counts = _segment_counts(batch_idx, num_proteins)
    protein_level_rep = prot_sums / jnp.maximum(counts, 1.0)[:, None]

    graph_feature = mlp_forward(protein_level_rep, packed["pw1"], packed["ps1"],
                                packed["pt1"], packed["pw2"], packed["pb2"])
    return graph_feature, residue_feature


# ---------------------------------------------------------------------------
# Pure-JAX reference (no Pallas) for the correctness check.
# ---------------------------------------------------------------------------
def _reference_forward(params, res_rep, batch_idx, num_proteins):
    def bn_eval(x, bn, axis):
        shape = [1] * x.ndim
        shape[axis] = -1
        g, b, m, v = (bn[k].reshape(shape) for k in ("gamma", "beta", "mean", "var"))
        return (x - m) / jnp.sqrt(v + BN_EPS) * g + b

    def conv(x, w, b, pad):   # x: (N, C, L), w: (Cout, Cin, K)
        y = lax.conv_general_dilated(x, w, (1,), [(pad, pad)],
                                     dimension_numbers=("NCH", "OIH", "NCH"))
        return y + b[None, :, None]

    x = jnp.transpose(res_rep, (0, 2, 1))
    x = jnp.maximum(bn_eval(conv(x, params["conv1_w"], params["conv1_b"], PAD1),
                            params["bn1"], 1), 0.0)
    x = jnp.maximum(bn_eval(conv(x, params["conv2_w"], params["conv2_b"], PAD2),
                            params["bn2"], 1), 0.0)
    res_flat = jnp.transpose(x, (0, 2, 1)).reshape(res_rep.shape[0], -1)

    sums = jax.ops.segment_sum(res_flat, batch_idx, num_segments=num_proteins)
    counts = _segment_counts(batch_idx, num_proteins)
    protein = sums / jnp.maximum(counts, 1.0)[:, None]

    def mlp(xx, q):
        h = xx @ q["w1"].T + q["b1"]
        h = jnp.maximum(bn_eval(h, q["bn"], 1), 0.0)
        return h @ q["w2"].T + q["b2"]

    return mlp(protein, params["proj_protein"]), mlp(res_flat, params["proj_residue"])


if __name__ == "__main__":
    # Small, module-consistent shapes (proj_dim = temporal_dim * output_dim = 128).
    input_dim, hidden_dim, output_dim, temporal_dim = 32, 16, 8, 16
    residue_inner_dim, residue_out_dim = 64, 32
    protein_inner_dim, protein_out_dim = 64, 32
    N, num_proteins = 20, 3

    key = jax.random.PRNGKey(0)
    kp, kx = jax.random.split(key)
    params = make_params(kp, input_dim, hidden_dim, output_dim, temporal_dim,
                         residue_inner_dim, residue_out_dim,
                         protein_inner_dim, protein_out_dim)
    res_rep = jax.random.normal(kx, (N, temporal_dim, input_dim), dtype=jnp.float32)
    batch_idx = jnp.array([0] * 7 + [1] * 7 + [2] * 6, dtype=jnp.int32)

    ref_g, ref_r = _reference_forward(params, res_rep, batch_idx, num_proteins)

    # f32 MXU operands; nb=8 exercises a multi-step grid, a partial last block
    # and the resident segment-sum accumulator.
    packed = pack_params(params, temporal_dim, jnp.float32)
    graph_feature, residue_feature = geom2vec_tematt_forward(
        packed, res_rep, batch_idx, num_proteins, nb=8)
    jax.block_until_ready((graph_feature, residue_feature))
    assert graph_feature.shape == (num_proteins, protein_out_dim)
    assert residue_feature.shape == (N, residue_out_dim)
    assert jnp.allclose(graph_feature, ref_g, atol=2e-3, rtol=2e-3)
    assert jnp.allclose(residue_feature, ref_r, atol=2e-3, rtol=2e-3)

    # bf16 MXU operands (f32 accumulation / BN / outputs): smoke check vs f32.
    packed_bf16 = pack_params(params, temporal_dim, jnp.bfloat16)
    g16, r16 = geom2vec_tematt_forward(packed_bf16, res_rep, batch_idx,
                                       num_proteins, nb=16)
    jax.block_until_ready((g16, r16))
    assert jnp.allclose(g16, graph_feature, atol=5e-2, rtol=5e-2)
    assert jnp.allclose(r16, residue_feature, atol=5e-2, rtol=5e-2)

    print("KERNEL_OK")
</pallas_src>

<mosaic_0001>
module attributes {stable_mosaic.version = 11 : i64} {
  func.func @_encoder_kernel(%arg0: i32, %arg1: memref<8x1xi32, #tpu.memory_space<vmem>>, %arg2: memref<8x512xf32, #tpu.memory_space<vmem>>, %arg3: memref<512x256xf32, #tpu.memory_space<vmem>>, %arg4: memref<1x256xf32, #tpu.memory_space<vmem>>, %arg5: memref<1x256xf32, #tpu.memory_space<vmem>>, %arg6: memref<256x128xf32, #tpu.memory_space<vmem>>, %arg7: memref<1x128xf32, #tpu.memory_space<vmem>>, %arg8: memref<1x128xf32, #tpu.memory_space<vmem>>, %arg9: memref<128x64xf32, #tpu.memory_space<vmem>>, %arg10: memref<1x64xf32, #tpu.memory_space<vmem>>, %arg11: memref<1x64xf32, #tpu.memory_space<vmem>>, %arg12: memref<64x32xf32, #tpu.memory_space<vmem>>, %arg13: memref<1x32xf32, #tpu.memory_space<vmem>>, %arg14: memref<3x128xf32, #tpu.memory_space<vmem>>, %arg15: memref<8x32xf32, #tpu.memory_space<vmem>>) attributes {dimension_semantics = [#tpu.dimension_semantics<arbitrary>], iteration_bounds = array<i64: 3>, scalar_prefetch = 0 : i64, scratch_operands = 0 : i64, tpu.core_type = #tpu.core_type<tc>, window_params = [{transform_indices = @transform_0, window_bounds = array<i64: 8, 1>}, {transform_indices = @transform_1, window_bounds = array<i64: 8, 512>}, {pipeline_mode = #tpu.pipeline_mode<synchronous>, transform_indices = @transform_2, window_bounds = array<i64: 512, 256>}, {pipeline_mode = #tpu.pipeline_mode<synchronous>, transform_indices = @transform_3, window_bounds = array<i64: 1, 256>}, {pipeline_mode = #tpu.pipeline_mode<synchronous>, transform_indices = @transform_4, window_bounds = array<i64: 1, 256>}, {pipeline_mode = #tpu.pipeline_mode<synchronous>, transform_indices = @transform_5, window_bounds = array<i64: 256, 128>}, {pipeline_mode = #tpu.pipeline_mode<synchronous>, transform_indices = @transform_6, window_bounds = array<i64: 1, 128>}, {pipeline_mode = #tpu.pipeline_mode<synchronous>, transform_indices = @transform_7, window_bounds = array<i64: 1, 128>}, {pipeline_mode = #tpu.pipeline_mode<synchronous>, transform_indices = @transform_8, window_bounds = array<i64: 128, 64>}, {pipeline_mode = #tpu.pipeline_mode<synchronous>, transform_indices = @transform_9, window_bounds = array<i64: 1, 64>}, {pipeline_mode = #tpu.pipeline_mode<synchronous>, transform_indices = @transform_10, window_bounds = array<i64: 1, 64>}, {pipeline_mode = #tpu.pipeline_mode<synchronous>, transform_indices = @transform_11, window_bounds = array<i64: 64, 32>}, {pipeline_mode = #tpu.pipeline_mode<synchronous>, transform_indices = @transform_12, window_bounds = array<i64: 1, 32>}, {pipeline_mode = #tpu.pipeline_mode<synchronous>, transform_indices = @transform_13, window_bounds = array<i64: 3, 128>}, {transform_indices = @transform_14, window_bounds = array<i64: 8, 32>}]} {
    %c0_i32 = arith.constant 0 : i32
    %0 = arith.cmpi eq, %arg0, %c0_i32 : i32
    %1 = arith.extui %0 : i1 to i32
    %c0_i32_0 = arith.constant 0 : i32
    %2 = arith.cmpi ne, %1, %c0_i32_0 : i32
    scf.if %2 {
      %cst_42 = arith.constant 0.000000e+00 : f32
      %63 = vector.broadcast %cst_42 : f32 to vector<3x128xf32>
      %c0_43 = arith.constant 0 : index
      %c0_44 = arith.constant 0 : index
      %64 = vector.load %arg14[%c0_43, %c0_44] : memref<3x128xf32, #tpu.memory_space<vmem>>, vector<3x128xf32>
      tpu.vector_store %arg14[%c0_43, %c0_44], %63 {strides = array<i32>} : memref<3x128xf32, #tpu.memory_space<vmem>>, vector<3x128xf32>,
    } else {
    }
    %c0 = arith.constant 0 : index
    %c0_1 = arith.constant 0 : index
    %3 = vector.load %arg2[%c0, %c0_1] : memref<8x512xf32, #tpu.memory_space<vmem>>, vector<8x512xf32>
    %c0_2 = arith.constant 0 : index
    %c0_3 = arith.constant 0 : index
    %4 = vector.load %arg3[%c0_2, %c0_3] : memref<512x256xf32, #tpu.memory_space<vmem>>, vector<512x256xf32>
    %cst = arith.constant dense<0.000000e+00> : vector<8x256xf32>
    %5 = tpu.matmul %3, %4, %cst {dimension_numbers = #tpu.dot_dimension_numbers<[1], [0], [0], [1], [0, 0, 1, 1], [], []>} : vector<8x512xf32>, vector<512x256xf32>, vector<8x256xf32> -> vector<8x256xf32>
    %c0_4 = arith.constant 0 : index
    %c0_5 = arith.constant 0 : index
    %6 = vector.load %arg4[%c0_4, %c0_5] : memref<1x256xf32, #tpu.memory_space<vmem>>, vector<1x256xf32>
    %7 = vector.broadcast %6 : vector<1x256xf32> to vector<8x256xf32>
    %8 = arith.mulf %5, %7 : vector<8x256xf32>
    %c0_6 = arith.constant 0 : index
    %c0_7 = arith.constant 0 : index
    %9 = vector.load %arg5[%c0_6, %c0_7] : memref<1x256xf32, #tpu.memory_space<vmem>>, vector<1x256xf32>
    %10 = vector.broadcast %9 : vector<1x256xf32> to vector<8x256xf32>
    %11 = arith.addf %8, %10 : vector<8x256xf32>
    %cst_8 = arith.constant 0.000000e+00 : f32
    %12 = vector.broadcast %cst_8 : f32 to vector<8x256xf32>
    %13 = arith.maximumf %11, %12 : vector<8x256xf32>
    %c0_9 = arith.constant 0 : index
    %c0_10 = arith.constant 0 : index
    %14 = vector.load %arg6[%c0_9, %c0_10] : memref<256x128xf32, #tpu.memory_space<vmem>>, vector<256x128xf32>
    %cst_11 = arith.constant dense<0.000000e+00> : vector<8x128xf32>
    %15 = tpu.matmul %13, %14, %cst_11 {dimension_numbers = #tpu.dot_dimension_numbers<[1], [0], [0], [1], [0, 0, 1, 1], [], []>} : vector<8x256xf32>, vector<256x128xf32>, vector<8x128xf32> -> vector<8x128xf32>
    %c0_12 = arith.constant 0 : index
    %c0_13 = arith.constant 0 : index
    %16 = vector.load %arg7[%c0_12, %c0_13] : memref<1x128xf32, #tpu.memory_space<vmem>>, vector<1x128xf32>
    %17 = vector.broadcast %16 : vector<1x128xf32> to vector<8x128xf32>
    %18 = arith.mulf %15, %17 : vector<8x128xf32>
    %c0_14 = arith.constant 0 : index
    %c0_15 = arith.constant 0 : index
    %19 = vector.load %arg8[%c0_14, %c0_15] : memref<1x128xf32, #tpu.memory_space<vmem>>, vector<1x128xf32>
    %20 = vector.broadcast %19 : vector<1x128xf32> to vector<8x128xf32>
    %21 = arith.addf %18, %20 : vector<8x128xf32>
    %cst_16 = arith.constant 0.000000e+00 : f32
    %22 = vector.broadcast %cst_16 : f32 to vector<8x128xf32>
    %23 = arith.maximumf %21, %22 : vector<8x128xf32>
    %c0_17 = arith.constant 0 : index
    %c0_18 = arith.constant 0 : index
    %24 = vector.load %arg9[%c0_17, %c0_18] : memref<128x64xf32, #tpu.memory_space<vmem>>, vector<128x64xf32>
    %cst_19 = arith.constant dense<0.000000e+00> : vector<8x64xf32>
    %25 = tpu.matmul %23, %24, %cst_19 {dimension_numbers = #tpu.dot_dimension_numbers<[1], [0], [0], [1], [0, 0, 1, 1], [], []>} : vector<8x128xf32>, vector<128x64xf32>, vector<8x64xf32> -> vector<8x64xf32>
    %c0_20 = arith.constant 0 : index
    %c0_21 = arith.constant 0 : index
    %26 = vector.load %arg10[%c0_20, %c0_21] : memref<1x64xf32, #tpu.memory_space<vmem>>, vector<1x64xf32>
    %27 = vector.broadcast %26 : vector<1x64xf32> to vector<8x64xf32>
    %28 = arith.mulf %25, %27 : vector<8x64xf32>
    %c0_22 = arith.constant 0 : index
    %c0_23 = arith.constant 0 : index
    %29 = vector.load %arg11[%c0_22, %c0_23] : memref<1x64xf32, #tpu.memory_space<vmem>>, vector<1x64xf32>
    %30 = vector.broadcast %29 : vector<1x64xf32> to vector<8x64xf32>
    %31 = arith.addf %28, %30 : vector<8x64xf32>
    %cst_24 = arith.constant 0.000000e+00 : f32
    %32 = vector.broadcast %cst_24 : f32 to vector<8x64xf32>
    %33 = arith.maximumf %31, %32 : vector<8x64xf32>
    %c0_25 = arith.constant 0 : index
    %c0_26 = arith.constant 0 : index
    %34 = vector.load %arg12[%c0_25, %c0_26] : memref<64x32xf32, #tpu.memory_space<vmem>>, vector<64x32xf32>
    %cst_27 = arith.constant dense<0.000000e+00> : vector<8x32xf32>
    %35 = tpu.matmul %33, %34, %cst_27 {dimension_numbers = #tpu.dot_dimension_numbers<[1], [0], [0], [1], [0, 0, 1, 1], [], []>} : vector<8x64xf32>, vector<64x32xf32>, vector<8x32xf32> -> vector<8x32xf32>
    %c0_28 = arith.constant 0 : index
    %c0_29 = arith.constant 0 : index
    %36 = vector.load %arg13[%c0_28, %c0_29] : memref<1x32xf32, #tpu.memory_space<vmem>>, vector<1x32xf32>
    %37 = vector.broadcast %36 : vector<1x32xf32> to vector<8x32xf32>
    %38 = arith.addf %35, %37 : vector<8x32xf32>
    %c0_30 = arith.constant 0 : index
    %c0_31 = arith.constant 0 : index
    %39 = vector.load %arg15[%c0_30, %c0_31] : memref<8x32xf32, #tpu.memory_space<vmem>>, vector<8x32xf32>
    tpu.vector_store %arg15[%c0_30, %c0_31], %38 {strides = array<i32>} : memref<8x32xf32, #tpu.memory_space<vmem>>, vector<8x32xf32>,
    %40 = tpu.iota {dimensions = array<i32: 0>} : vector<8x1xi32>
    %c8_i32 = arith.constant 8 : i32
    %41 = arith.muli %arg0, %c8_i32 : i32
    %42 = vector.broadcast %41 : i32 to vector<8x1xi32>
    %43 = arith.addi %40, %42 : vector<8x1xi32>
    %c20_i32 = arith.constant 20 : i32
    %44 = vector.broadcast %c20_i32 : i32 to vector<8x1xi32>
    %45 = arith.cmpi slt, %43, %44 : vector<8x1xi32>
    %46 = tpu.iota {dimensions = array<i32: 1>} : vector<8x3xi32>
    %c0_32 = arith.constant 0 : index
    %c0_33 = arith.constant 0 : index
    %47 = vector.load %arg1[%c0_32, %c0_33] : memref<8x1xi32, #tpu.memory_space<vmem>>, vector<8x1xi32>
    %48 = vector.broadcast %47 : vector<8x1xi32> to vector<8x3xi32>
    %49 = arith.cmpi eq, %48, %46 : vector<8x3xi32>
    %50 = vector.broadcast %45 : vector<8x1xi1> to vector<8x3xi1>
    %51 = arith.andi %49, %50 : vector<8x3xi1>
    %cst_34 = arith.constant 1.000000e+00 : f32
    %cst_35 = arith.constant 0.000000e+00 : f32
    %52 = vector.broadcast %cst_34 : f32 to vector<8x3xf32>
    %53 = vector.broadcast %cst_35 : f32 to vector<8x3xf32>
    %54 = arith.select %51, %52, %53 : vector<8x3xi1>, vector<8x3xf32>
    %cst_36 = arith.constant 0.000000e+00 : f32
    %55 = vector.broadcast %cst_36 : f32 to vector<8x128xf32>
    %56 = vector.shape_cast %45 : vector<8x1xi1> to vector<8x1xi1>
    %57 = vector.broadcast %56 : vector<8x1xi1> to vector<8x128xi1>
    %58 = arith.select %57, %23, %55 : vector<8x128xi1>, vector<8x128xf32>
    %c0_37 = arith.constant 0 : index
    %c0_38 = arith.constant 0 : index
    %59 = vector.load %arg14[%c0_37, %c0_38] : memref<3x128xf32, #tpu.memory_space<vmem>>, vector<3x128xf32>
    %cst_39 = arith.constant dense<0.000000e+00> : vector<3x128xf32>
    %60 = tpu.matmul %54, %58, %cst_39 {dimension_numbers = #tpu.dot_dimension_numbers<[0], [0], [1], [1], [0, 1, 1, 1], [], []>} : vector<8x3xf32>, vector<8x128xf32>, vector<3x128xf32> -> vector<3x128xf32>
    %61 = arith.addf %59, %60 : vector<3x128xf32>
    %c0_40 = arith.constant 0 : index
    %c0_41 = arith.constant 0 : index
    %62 = vector.load %arg14[%c0_40, %c0_41] : memref<3x128xf32, #tpu.memory_space<vmem>>, vector<3x128xf32>
    tpu.vector_store %arg14[%c0_40, %c0_41], %61 {strides = array<i32>} : memref<3x128xf32, #tpu.memory_space<vmem>>, vector<3x128xf32>,
    return
  }
  func.func @transform_0(%arg0: i32) -> (i32, i32) {
    %c0_i32 = arith.constant 0 : i32
    %c0_i32_0 = arith.constant 0 : i32
    return %arg0, %c0_i32 : i32, i32
  }
  func.func @transform_1(%arg0: i32) -> (i32, i32) {
    %c0_i32 = arith.constant 0 : i32
    %c0_i32_0 = arith.constant 0 : i32
    return %arg0, %c0_i32 : i32, i32
  }
  func.func @transform_2(%arg0: i32) -> (i32, i32) {
    %c0_i32 = arith.constant 0 : i32
    %c0_i32_0 = arith.constant 0 : i32
    %c0_i32_1 = arith.constant 0 : i32
    return %c0_i32, %c0_i32_0 : i32, i32
  }
  func.func @transform_3(%arg0: i32) -> (i32, i32) {
    %c0_i32 = arith.constant 0 : i32
    %c0_i32_0 = arith.constant 0 : i32
    %c0_i32_1 = arith.constant 0 : i32
    return %c0_i32, %c0_i32_0 : i32, i32
  }
  func.func @transform_4(%arg0: i32) -> (i32, i32) {
    %c0_i32 = arith.constant 0 : i32
    %c0_i32_0 = arith.constant 0 : i32
    %c0_i32_1 = arith.constant 0 : i32
    return %c0_i32, %c0_i32_0 : i32, i32
  }
  func.func @transform_5(%arg0: i32) -> (i32, i32) {
    %c0_i32 = arith.constant 0 : i32
    %c0_i32_0 = arith.constant 0 : i32
    %c0_i32_1 = arith.constant 0 : i32
    return %c0_i32, %c0_i32_0 : i32, i32
  }
  func.func @transform_6(%arg0: i32) -> (i32, i32) {
    %c0_i32 = arith.constant 0 : i32
    %c0_i32_0 = arith.constant 0 : i32
    %c0_i32_1 = arith.constant 0 : i32
    return %c0_i32, %c0_i32_0 : i32, i32
  }
  func.func @transform_7(%arg0: i32) -> (i32, i32) {
    %c0_i32 = arith.constant 0 : i32
    %c0_i32_0 = arith.constant 0 : i32
    %c0_i32_1 = arith.constant 0 : i32
    return %c0_i32, %c0_i32_0 : i32, i32
  }
  func.func @transform_8(%arg0: i32) -> (i32, i32) {
    %c0_i32 = arith.constant 0 : i32
    %c0_i32_0 = arith.constant 0 : i32
    %c0_i32_1 = arith.constant 0 : i32
    return %c0_i32, %c0_i32_0 : i32, i32
  }
  func.func @transform_9(%arg0: i32) -> (i32, i32) {
    %c0_i32 = arith.constant 0 : i32
    %c0_i32_0 = arith.constant 0 : i32
    %c0_i32_1 = arith.constant 0 : i32
    return %c0_i32, %c0_i32_0 : i32, i32
  }
  func.func @transform_10(%arg0: i32) -> (i32, i32) {
    %c0_i32 = arith.constant 0 : i32
    %c0_i32_0 = arith.constant 0 : i32
    %c0_i32_1 = arith.constant 0 : i32
    return %c0_i32, %c0_i32_0 : i32, i32
  }
  func.func @transform_11(%arg0: i32) -> (i32, i32) {
    %c0_i32 = arith.constant 0 : i32
    %c0_i32_0 = arith.constant 0 : i32
    %c0_i32_1 = arith.constant 0 : i32
    return %c0_i32, %c0_i32_0 : i32, i32
  }
  func.func @transform_12(%arg0: i32) -> (i32, i32) {
    %c0_i32 = arith.constant 0 : i32
    %c0_i32_0 = arith.constant 0 : i32
    %c0_i32_1 = arith.constant 0 : i32
    return %c0_i32, %c0_i32_0 : i32, i32
  }
  func.func @transform_13(%arg0: i32) -> (i32, i32) {
    %c0_i32 = arith.constant 0 : i32
    %c0_i32_0 = arith.constant 0 : i32
    %c0_i32_1 = arith.constant 0 : i32
    return %c0_i32, %c0_i32_0 : i32, i32
  }
  func.func @transform_14(%arg0: i32) -> (i32, i32) {
    %c0_i32 = arith.constant 0 : i32
    %c0_i32_0 = arith.constant 0 : i32
    return %arg0, %c0_i32 : i32, i32
  }
}

</mosaic_0001>

<bundles_post_ra>
// kernel: tpu_custom_call.1
= control target key start
LH: loop header
LB: loop body
LE: loop exit
PB: predicated region body
PF: predicated region fallthrough
CT: control target
= control target key end

     0   :  { %s2411_s0 = inlined_call_operand.vmem [shape: s32[20,1], index: 0, kind: input, shape index: {}]   ;;  %s2412_s1 = inlined_call_operand.hbm [shape: f32[20,512], index: 1, kind: input, shape index: {}]   ;;  %s2413_s2 = inlined_call_operand.hbm [shape: f32[512,256], index: 2, kind: input, shape index: {}]   ;;  %s2414_s3 = inlined_call_operand.vmem [shape: f32[1,256], index: 3, kind: input, shape index: {}]   ;;  %s2415_s4 = inlined_call_operand.hbm [shape: f32[1,256], index: 4, kind: input, shape index: {}]   ;;  %s2416_s5 = inlined_call_operand.vmem [shape: f32[256,128], index: 5, kind: input, shape index: {}]   ;;  %s2417_s6 = inlined_call_operand.vmem [shape: f32[1,128], index: 6, kind: input, shape index: {}]   ;;  %s2418_s7 = inlined_call_operand.hbm [shape: f32[1,128], index: 7, kind: input, shape index: {}]   ;;  %s2419_s8 = inlined_call_operand.vmem [shape: f32[128,64], index: 8, kind: input, shape index: {}]   ;;  %s2420_s9 = inlined_call_operand.vmem [shape: f32[1,64], index: 9, kind: input, shape index: {}]   ;;  %s2421_s10 = inlined_call_operand.vmem [shape: f32[1,64], index: 10, kind: input, shape index: {}]   ;;  %s2422_s11 = inlined_call_operand.vmem [shape: f32[64,32], index: 11, kind: input, shape index: {}]   ;;  %s2423_s12 = inlined_call_operand.vmem [shape: f32[1,32], index: 12, kind: input, shape index: {}]   ;;  %s2424_s13 = inlined_call_operand.hbm [shape: f32[3,128], index: 13, kind: output, shape index: {0}]   ;;  %s2425_s14 = inlined_call_operand.hbm [shape: f32[20,32], index: 14, kind: output, shape index: {1}]  }
   0x1   :  { %2436 = sst [smem:[#allocation23_spill]] %s2413_s2 }
   0x2   :  { %2437 = sst [smem:[#allocation24_spill]] %s2415_s4 }
   0x3   :  { %2438 = sst [smem:[#allocation25_spill]] %s2418_s7 }
   0x4   :  { %2439 = sst [smem:[#allocation26_spill]] %s2425_s14 }
   0x5   :  { %20 = vsyncpa [#allocation3], 0 }
   0x6   :  { %22 = vsyncpa [#allocation3 + $0x1], 0 }
   0x7   :  { %23 = vsyncpa [#allocation6], 0 }
   0x8   :  { %24 = vsyncpa [#allocation9], 0 }
   0x9   :  { %25 = vsyncpa [#allocation4], 0 }
   0xa   :  { %26 = vsyncpa [#allocation12], 0 }
   0xb   :  { %28 = vsyncpa [#allocation12 + $0x1], 0  ;;  %s1979_s29 = smov 0   ;;  %s1981_s30 = smov 0  }
   0xc   :  { %s1983_s15 = smov 0   ;;  %s1985_s16 = smov 0  }
   0xd LB: > { %2440 = sst [smem:[#allocation18_spill]] %s1878_s29  ;;  %s2000_s17 = sadd.s32 4294967295, %s1890_s16   ;;  %s1890_s16 = sphi %s1985_s16, %s2471_s16   ;;  %s1886_s15 = sphi %s1983_s15, %s2473_s15   ;;  %s1882_s30 = sphi %s1981_s30, %s2475_s30   ;;  %s1878_s29 = sphi %s1979_s29, %s2474_s29  }
   0xe   : > { %2441 = sst [smem:[#allocation19_spill]] %s1886_s15  ;;  %s1438_s18 = sadd.s32 4294967294, %s1890_s16  }
   0xf   : > { %p80_p0 = scmp.ne.s32.totalorder %s1882_s30, %s1878_s29  ;;  %p2428_p1 = scmp.eq.s32.totalorder %s2000_s17, 0 }
  0x10   : > { %p362_p3 = scmp.eq.s32.totalorder %s1438_s18, 2  ;;  %p1439_p5 = scmp.ge.s32.totalorder %s1890_s16, 1 }
  0x11   : > { %p2009_p4 = por %p2428_p1, %p80_p0  ;;  %p369_p7 = scmp.lt.s32.totalorder %s1890_s16, 4 }
  0x12   : > { %p2014_p6 = por %p362_p3, %p80_p0  ;;  %s1892_s22 = smov [#allocation5]  }
  0x13   : > { %s2442_s19 = scalar_select %p2009_p4, 1, 0 }
  0x14   : > { %s2443_s20 = scalar_select %p2014_p6, 1, 0 }
  0x15   : > { %p2020_p9 = pnand %p1439_p5, %p369_p7  ;;  %s381_s23 = sshll.u32 %s1892_s22, 4  ;;  %s382_s23 = int_to_ptr.vmem [resolvable:$true] %s381_s23 }
  0x16   : > { %2444 = sst [smem:[#allocation20_spill]] %s2443_s20  ;;  %s1893_s25 = smov [#allocation7]  }
  0x17   : > { %s2445_s21 = scalar_select %p2020_p9, 1, 0 }
  0x18   : > { %p1613_p10 = pneg %p2020_p9  ;;  %s398_s26 = sshll.u32 %s1893_s25, 4  ;;  %s399_s26 = int_to_ptr.vmem [resolvable:$true] %s398_s26 }
  0x19   : > { %s1894_s27 = smov [#allocation8]   ;;  %s1695_s18 = scalar_lea.vmem %s382_s23, 16384 }
  0x1a   : > { %p2028_p11 = pnand %p1613_p10, %p2428_p1  ;;  %s415_s28 = sshll.u32 %s1894_s27, 4  ;;  %s416_s28 = int_to_ptr.vmem [resolvable:$true] %s415_s28 }
  0x1b   : > { %p1696_p13 = scmp.ne.s32.totalorder %s382_s23, %s1695_s18  ;;  %p1703_p5 = scmp.lt.s32.totalorder %s382_s23, %s382_s23 }
  0x1c   : > { %p1686_p12 = pneg %p2028_p11  ;;  %p1704_p7 = scmp.lt.s32.totalorder %s1695_s18, %s1695_s18 }
  0x1e   : > { %p1698_p0 = pnand %p1696_p13, %p1686_p12  ;;  %p1705_p10 = por %p1704_p7, %p1703_p5 }
  0x20   : > { %p1699_p3 = pneg %p1698_p0 }
  0x22   : > { %p1706_p8 = pnand %p1705_p10, %p1699_p3 }
  0x24   : > { %1709 = shalt.err (!%p1706_p8)
}
  0x25   : > { %s1895_s22 = smov 256   ;;  %s1896_s25 = smov 16  }
  0x26   : > { %s2447_s2 = sld [smem:[#allocation23_spill]]  ;;  %s1721_s29 = scalar_lea.vmem %s399_s26, 32 }
  0x27   : > { %p1722_p1 = scmp.ne.s32.totalorder %s399_s26, %s1721_s29  ;;  %p1729_p2 = scmp.lt.s32.totalorder %s399_s26, %s399_s26 }
  0x28   : > { %p1730_p6 = scmp.lt.s32.totalorder %s1721_s29, %s1721_s29 }
  0x29   : > { %p1724_p13 = pnand %p1722_p1, %p1686_p12 }
  0x2a   : > { %p1731_p5 = por %p1730_p6, %p1729_p2 }
  0x2b   : > { %p1725_p0 = pneg %p1724_p13 }
  0x2c   : > { %1616 = dma.hbm_to_vmem [thread:$0]  (!%p2028_p11), %s2447_s2, 16384, %s382_s23, [#allocation6], %s1895_s22, %s1895_s22, %s1896_s25  }
  0x2d   : > { %p1732_p3 = pnand %p1731_p5, %p1725_p0 }
  0x2f   : > { %1735 = shalt.err (!%p1732_p3)
}
  0x30   : > { %s2448_s4 = sld [smem:[#allocation24_spill]]  ;;  %s1747_s20 = scalar_lea.vmem %s416_s28, 16 }
  0x31   : > { %p1748_p8 = scmp.ne.s32.totalorder %s416_s28, %s1747_s20  ;;  %s1754_s23 = scalar_lea.vmem %s416_s28, 32 }
  0x32   : > { %p1755_p10 = scmp.lt.s32.totalorder %s416_s28, %s416_s28  ;;  %p1756_p13 = scmp.lt.s32.totalorder %s1754_s23, %s1747_s20 }
  0x33   : > { %p1750_p7 = pnand %p1748_p8, %p1686_p12 }
  0x34   : > { %p1757_p2 = por %p1756_p13, %p1755_p10 }
  0x35   : > { %p1751_p1 = pneg %p1750_p7 }
  0x36   : > { %1619 = dma.hbm_to_vmem [thread:$0]  (!%p2028_p11), %s2448_s4, 32, %s399_s26, [#allocation6]  }
  0x37   : > { %p1758_p6 = pnand %p1757_p2, %p1751_p1 }
  0x39   : > { %1761 = shalt.err (!%p1758_p6)
}
  0x3a   : > { %s2449_s7 = sld [smem:[#allocation25_spill]]  ;;  %s2059_s14 = sadd.s32 1, %s1890_s16  }
  0x3b   : > { %2450 = sst [smem:[#allocation21_spill]] %s2059_s14  ;;  %s64_s26 = ssub.s32 %s1890_s16, %s2059_s14 }
  0x3c   : > { %s67_s24 = sadd.s32 1, %s1886_s15  ;;  %p65_p12 = scmp.eq.s32.totalorder %s64_s26, 0 }
  0x3d   : > { %p74_p0 = scmp.ne.s32.totalorder %s1886_s15, %s1882_s30  ;;  %p75_p5 = scmp.eq.s32.totalorder %s1890_s16, 0 }
  0x3e   : > { %p1634_p3 = scmp.lt.s32.totalorder %s1890_s16, 3  ;;  %p2452_p7 = scmp.eq.s32.totalorder %s2000_s17, 2 }
  0x3f   : > { %s2069_s25 = scalar_select %p65_p12, %s1886_s15, %s67_s24  }
  0x40   : > { %1622 = dma.hbm_to_vmem [thread:$0]  (!%p2028_p11), %s2449_s7, 16, %s416_s28, [#allocation9]  }
  0x41   : > { %2451 = sst [smem:[#allocation22_spill]] %s2069_s25  ;;  %p76_p8 = por %p75_p5, %p74_p0 }
  0x42   : > { %p2073_p1 = por %p2452_p7, %p74_p0  ;;  %s448_s18 = sand.u32 1, %s1886_s15  }
  0x43   : > { %s1470_s20 = sshll.u32 %s1890_s16, 9  ;;  %s1444_s28 = sshll.u32 %s448_s18, 5 }
  0x44   : > { %s2453_s27 = scalar_select %p2073_p1, 1, 0 }
  0x45   : > { %s2082_s22 = scalar_lea.hbm %s2412_s1, %s1470_s20  ;;  %s452_s26 = scalar_lea.vmem [#allocation2], %s1444_s28 }
  0x46   : > { %s460_s24 = sshll.u32 %s452_s26, 4  ;;  %p2084_p11 = pnand %p1634_p3, %p76_p8  ;;  %s461_s24 = int_to_ptr.vmem [resolvable:$true] %s460_s24 }
  0x47   : > { %s449_s4 = scalar_lea.sflag [#allocation3], %s448_s18  ;;  %s1762_s7 = scalar_lea.hbm %s2082_s22, 512 }
  0x48   : > { %p1763_p10 = scmp.ne.s32.totalorder %s2082_s22, %s1762_s7  ;;  %p1764_p13 = pneg %p2084_p11 }
  0x49   : > { %s1767_s29 = scalar_lea.hbm %s2412_s1, 1536  ;;  %p1768_p12 = scmp.lt.s32.totalorder %s2082_s22, %s2412_s1 }
  0x4a   : > { %p1765_p2 = pnand %p1764_p13, %p1763_p10  ;;  %p1769_p0 = scmp.lt.s32.totalorder %s1767_s29, %s1762_s7 }
  0x4c   : > { %p1766_p6 = pneg %p1765_p2  ;;  %p1770_p5 = por %p1769_p0, %p1768_p12 }
  0x4e   : > { %p1771_p3 = pnand %p1770_p5, %p1766_p6 }
  0x50   : > { %1774 = shalt.err (!%p1771_p3)
}
  0x51   : > { %s1775_s26 = scalar_lea.vmem %s461_s24, 512  ;;  %s1897_s18 = smov [#allocation2]  }
  0x52   : > { %p1776_p8 = scmp.ne.s32.totalorder %s461_s24, %s1775_s26  ;;  %s1780_s15 = sshll.u32 %s1897_s18, 4  ;;  %s1781_s15 = int_to_ptr.vmem [resolvable:$false] %s1780_s15 }
  0x53   : > { %s1782_s14 = scalar_lea.vmem %s1781_s15, 1024  ;;  %p1783_p10 = scmp.lt.s32.totalorder %s461_s24, %s1781_s15 }
  0x54   : > { %p1778_p7 = pnand %p1776_p8, %p1764_p13  ;;  %p1784_p2 = scmp.lt.s32.totalorder %s1782_s14, %s1775_s26 }
  0x56   : > { %p1779_p1 = pneg %p1778_p7  ;;  %p1785_p4 = por %p1784_p2, %p1783_p10 }
  0x58   : > { %p1786_p9 = pnand %p1785_p4, %p1779_p1 }
  0x5a   : > { %1789 = shalt.err (!%p1786_p9)
}
  0x5b   : > { %1626 = dma.hbm_to_vmem [thread:$0]  (!%p2084_p11), %s2082_s22, 512, %s461_s24, %s449_s4  }
  0x5c   : > { %p2455_p6 = scmp.ne.s32.totalorder %s2445_s21, 0 }
  0x5d   : > { %s2105_s7 = sand.u32 (!%p2455_p6), 1, %s1882_s30   ;;  %p2456_p13 = scmp.ne.s32.totalorder (!%p2455_p6), %s2442_s19, 0 }
  0x5e   : > { %469 = sbr.rel (%p2455_p6) target bundleno = 1002 (0x3ea), region = 72  ;;  %s1448_s25 = sshll.u32 (!%p2455_p6), %s2105_s7, 5 }
  0x5f   : > { %s472_s20 = scalar_lea.sflag (!%p2455_p6), [#allocation3], %s2105_s7  ;;  %s2109_s15 = scalar_lea.vmem (!%p2455_p6), [#allocation2], %s1448_s25 }
  0x63   : > { %1857 = dma.done.wait (%p2456_p13), %s472_s20, 512  }
  0x64   : > { %1859 = vsyncadd (%p2456_p13), %s472_s20, 4294966784  ;;  %p2457_p4 = scmp.eq.s32.totalorder %s2000_s17, 0 }
  0x66   : > { %1861 = dma.done.wait (%p2457_p4), [#allocation6], 16416   ;;  %p2458_p9 = pmov %p2457_p4 }
  0x67   : > { %p2459_p1 = pmov %p2457_p4 }
  0x68   : > { %1863 = vsyncadd (%p2458_p9), [#allocation6], 4294950880 }
  0x69   : > { %1865 = dma.done.wait (%p2459_p1), [#allocation9], 16   ;;  %p2460_p11 = pmov %p2459_p1 }
  0x6a   : > { %s1452_s2 = sshll.u32 %s2105_s7, 3  ;;  %p536_p12 = scmp.lt.s32.totalorder %s2000_s17, 2 }
  0x6b   : > { %1867 = vsyncadd (%p2460_p11), [#allocation9], 4294967280  ;;  %s2131_s24 = scalar_lea.vmem [#allocation11], %s1452_s2  ;;  %p2461_p0 = scmp.ne.s32.totalorder %s2000_s17, 0 }
  0x6c   : > { %s537_s4 = scalar_select %p536_p12, %s2000_s17, 2 }
  0x6d   : > { %543 = sbr.rel (%p2461_p0) target bundleno = 116 (0x74), region = 92 }
  0x6e   : > { %s1453_s19 = sshll.u32 %s537_s4, 3 }
  0x6f   : > { %s2129_s22 = scalar_lea.vmem %s2411_s0, %s1453_s19 }
  0x72   : > { %v1898_v0 = vmov 0.0  }
  0x73   : > { %544 = vst [vmem:[#allocation10] sm:$0x7] %v1898_v0 }
  0x74 PF: > { %v580_v1 = vld [vmem:[#allocation5 + $0xf8] sm:$0xff]  ;;  %v579_v3 = vld [vmem:[#allocation5 + $0xf0] sm:$0xff]  ;;  %v578_v5 = vld [vmem:[#allocation5 + $0xe8] sm:$0xff]  ;;  %s1461_s26 = sshll.u32 %s2000_s17, 3  ;;  %vm1901_vm0 = vmmov 0   ;;  %vm1213_vm4 = vcmask 64512  }
  0x75   : > { %v644_v2 = vld [vmem:[#allocation5 + $0x2f8] sm:$0xff]  ;;  %677 = vmatprep.subr.mxu0 %v580_v1  ;;  %v643_v4 = vld [vmem:[#allocation5 + $0x2f0] sm:$0xff]  ;;  %v642_v6 = vld [vmem:[#allocation5 + $0x2e8] sm:$0xff]  ;;  %vm1086_vm5 = vcmask 523264   ;;  %s1902_s23 = smov [#allocation10]   ;;  %p2462_p3 = scmp.eq.s32.totalorder %s2000_s17, 2 }
  0x76   : > { %748 = vmatprep.subr.mxu1 %v644_v2  ;;  %678 = vmatpush1.msra.mxu0 %v579_v3  ;;  %v577_v7 = vld [vmem:[#allocation5 + $0xe0] sm:$0xff]  ;;  %v576_v9 = vld [vmem:[#allocation5 + $0xd8] sm:$0xff]  ;;  %v575_v11 = vld [vmem:[#allocation5 + $0xd0] sm:$0xff]  ;;  %s1301_s29 = sshll.u32 %s1902_s23, 4  ;;  %s1302_s29 = int_to_ptr.vmem [resolvable:$true] %s1301_s29 }
  0x77   : > { %749 = vmatpush1.msra.mxu1 %v643_v4  ;;  %v641_v8 = vld [vmem:[#allocation5 + $0x2e0] sm:$0xff]  ;;  %679 = vmatprep.subr.mxu0 %v578_v5  ;;  %v640_v10 = vld [vmem:[#allocation5 + $0x2d8] sm:$0xff]  ;;  %v639_v12 = vld [vmem:[#allocation5 + $0x2d0] sm:$0xff]  ;;  %s1790_s28 = scalar_lea.vmem %s1302_s29, 64  ;;  %p1797_p10 = scmp.lt.s32.totalorder %s1302_s29, %s1302_s29 }
  0x78   : > { %750 = vmatprep.subr.mxu1 %v642_v6  ;;  %680 = vmatpush1.msra.mxu0 %v577_v7  ;;  %v574_v13 = vld [vmem:[#allocation5 + $0xc8] sm:$0xff]  ;;  %v573_v15 = vld [vmem:[#allocation5 + $0xc0] sm:$0xff]  ;;  %v572_v17 = vld [vmem:[#allocation5 + $0xb8] sm:$0xff]  ;;  %p1791_p5 = scmp.ne.s32.totalorder %s1302_s29, %s1790_s28  ;;  %p1798_p2 = scmp.lt.s32.totalorder %s1790_s28, %s1790_s28 }
  0x79   : > { %751 = vmatpush1.msra.mxu1 %v641_v8  ;;  %v638_v14 = vld [vmem:[#allocation5 + $0x2c8] sm:$0xff]  ;;  %681 = vmatprep.subr.mxu0 %v576_v9  ;;  %v637_v16 = vld [vmem:[#allocation5 + $0x2c0] sm:$0xff]  ;;  %v636_v18 = vld [vmem:[#allocation5 + $0x2b8] sm:$0xff] }
  0x7a   : > { %752 = vmatprep.subr.mxu1 %v640_v10  ;;  %682 = vmatpush1.msra.mxu0 %v575_v11  ;;  %v571_v19 = vld [vmem:[#allocation5 + $0xb0] sm:$0xff]  ;;  %v570_v21 = vld [vmem:[#allocation5 + $0xa8] sm:$0xff]  ;;  %v569_v23 = vld [vmem:[#allocation5 + $0xa0] sm:$0xff]  ;;  %p1792_p8 = pnand %p1791_p5, %p2462_p3  ;;  %p1799_p6 = por %p1798_p2, %p1797_p10 }
  0x7b   : > { %753 = vmatpush1.msra.mxu1 %v639_v12  ;;  %683 = vmatprep.subr.mxu0 %v574_v13  ;;  %v635_v20 = vld [vmem:[#allocation5 + $0x2b0] sm:$0xff]  ;;  %v634_v22 = vld [vmem:[#allocation5 + $0x2a8] sm:$0xff]  ;;  %v633_v24 = vld [vmem:[#allocation5 + $0x2a0] sm:$0xff] }
  0x7c   : > { %754 = vmatprep.subr.mxu1 %v638_v14  ;;  %684 = vmatpush1.msra.mxu0 %v573_v15  ;;  %v568_v25 = vld [vmem:[#allocation5 + $0x98] sm:$0xff]  ;;  %v567_v27 = vld [vmem:[#allocation5 + $0x90] sm:$0xff]  ;;  %v566_v29 = vld [vmem:[#allocation5 + $0x88] sm:$0xff]  ;;  %p1793_p7 = pneg %p1792_p8 }
  0x7d   : > { %755 = vmatpush1.msra.mxu1 %v637_v16  ;;  %685 = vmatprep.subr.mxu0 %v572_v17  ;;  %v632_v26 = vld [vmem:[#allocation5 + $0x298] sm:$0xff]  ;;  %v631_v28 = vld [vmem:[#allocation5 + $0x290] sm:$0xff]  ;;  %v630_v30 = vld [vmem:[#allocation5 + $0x288] sm:$0xff] }
  0x7e   : > { %756 = vmatprep.subr.mxu1 %v636_v18  ;;  %686 = vmatpush1.msra.mxu0 %v571_v19  ;;  %v565_v31 = vld [vmem:[#allocation5 + $0x80] sm:$0xff]  ;;  %v564_v33 = vld [vmem:[#allocation5 + $0x78] sm:$0xff]  ;;  %v563_v35 = vld [vmem:[#allocation5 + $0x70] sm:$0xff]  ;;  %p1800_p13 = pnand %p1799_p6, %p1793_p7 }
  0x7f   : > { %757 = vmatpush1.msra.mxu1 %v635_v20  ;;  %687 = vmatprep.subr.mxu0 %v570_v21  ;;  %v629_v32 = vld [vmem:[#allocation5 + $0x280] sm:$0xff]  ;;  %v628_v34 = vld [vmem:[#allocation5 + $0x278] sm:$0xff]  ;;  %v627_v36 = vld [vmem:[#allocation5 + $0x270] sm:$0xff] }
  0x80   : > { %758 = vmatprep.subr.mxu1 %v634_v22  ;;  %688 = vmatpush1.msra.mxu0 %v569_v23  ;;  %v562_v37 = vld [vmem:[#allocation5 + $0x68] sm:$0xff]  ;;  %v561_v39 = vld [vmem:[#allocation5 + $0x60] sm:$0xff]  ;;  %v560_v41 = vld [vmem:[#allocation5 + $0x58] sm:$0xff] }
  0x81   : > { %759 = vmatpush1.msra.mxu1 %v633_v24  ;;  %689 = vmatprep.subr.mxu0 %v568_v25  ;;  %v626_v38 = vld [vmem:[#allocation5 + $0x268] sm:$0xff]  ;;  %v625_v40 = vld [vmem:[#allocation5 + $0x260] sm:$0xff]  ;;  %v624_v42 = vld [vmem:[#allocation5 + $0x258] sm:$0xff] }
  0x82   : > { %760 = vmatprep.subr.mxu1 %v632_v26  ;;  %690 = vmatpush1.msra.mxu0 %v567_v27  ;;  %v559_v43 = vld [vmem:[#allocation5 + $0x50] sm:$0xff]  ;;  %v558_v45 = vld [vmem:[#allocation5 + $0x48] sm:$0xff]  ;;  %v557_v47 = vld [vmem:[#allocation5 + $0x40] sm:$0xff] }
  0x83   : > { %761 = vmatpush1.msra.mxu1 %v631_v28  ;;  %691 = vmatprep.subr.mxu0 %v566_v29  ;;  %v623_v44 = vld [vmem:[#allocation5 + $0x250] sm:$0xff]  ;;  %v622_v46 = vld [vmem:[#allocation5 + $0x248] sm:$0xff]  ;;  %v621_v48 = vld [vmem:[#allocation5 + $0x240] sm:$0xff] }
  0x84   : > { %762 = vmatprep.subr.mxu1 %v630_v30  ;;  %692 = vmatpush1.msra.mxu0 %v565_v31  ;;  %v556_v49 = vld [vmem:[#allocation5 + $0x38] sm:$0xff]  ;;  %v555_v51 = vld [vmem:[#allocation5 + $0x30] sm:$0xff]  ;;  %v554_v53 = vld [vmem:[#allocation5 + $0x28] sm:$0xff] }
  0x85   : > { %763 = vmatpush1.msra.mxu1 %v629_v32  ;;  %693 = vmatprep.subr.mxu0 %v564_v33  ;;  %v620_v50 = vld [vmem:[#allocation5 + $0x238] sm:$0xff]  ;;  %v619_v52 = vld [vmem:[#allocation5 + $0x230] sm:$0xff]  ;;  %v618_v54 = vld [vmem:[#allocation5 + $0x228] sm:$0xff] }
  0x86   : > { %764 = vmatprep.subr.mxu1 %v628_v34  ;;  %694 = vmatpush1.msra.mxu0 %v563_v35  ;;  %v553_v55 = vld [vmem:[#allocation5 + $0x20] sm:$0xff]  ;;  %v552_v57 = vld [vmem:[#allocation5 + $0x18] sm:$0xff]  ;;  %v551_v59 = vld [vmem:[#allocation5 + $0x10] sm:$0xff] }
  0x87   : > { %765 = vmatpush1.msra.mxu1 %v627_v36  ;;  %695 = vmatprep.subr.mxu0 %v562_v37  ;;  %v617_v56 = vld [vmem:[#allocation5 + $0x220] sm:$0xff]  ;;  %v616_v58 = vld [vmem:[#allocation5 + $0x218] sm:$0xff]  ;;  %v615_v60 = vld [vmem:[#allocation5 + $0x210] sm:$0xff] }
  0x88   : > { %766 = vmatprep.subr.mxu1 %v626_v38  ;;  %696 = vmatpush1.msra.mxu0 %v561_v39  ;;  %v550_v61 = vld [vmem:[#allocation5 + $0x8] sm:$0xff]  ;;  %v549_v63 = vld [vmem:[#allocation5] sm:$0xff]  ;;  %v612_v1 = vld [vmem:[#allocation5 + $0x1f8] sm:$0xff] }
  0x89   : > { %767 = vmatpush1.msra.mxu1 %v625_v40  ;;  %697 = vmatprep.subr.mxu0 %v560_v41  ;;  %v614_v62 = vld [vmem:[#allocation5 + $0x208] sm:$0xff]  ;;  %v613_v0 = vld [vmem:[#allocation5 + $0x200] sm:$0xff]  ;;  %v676_v2 = vld [vmem:[#allocation5 + $0x3f8] sm:$0xff] }
  0x8a   : > { %768 = vmatprep.subr.mxu1 %v624_v42  ;;  %698 = vmatpush1.msra.mxu0 %v559_v43  ;;  %v611_v3 = vld [vmem:[#allocation5 + $0x1f0] sm:$0xff]  ;;  %v610_v5 = vld [vmem:[#allocation5 + $0x1e8] sm:$0xff]  ;;  %v609_v7 = vld [vmem:[#allocation5 + $0x1e0] sm:$0xff] }
  0x8b   : > { %769 = vmatpush1.msra.mxu1 %v623_v44  ;;  %699 = vmatprep.subr.mxu0 %v558_v45  ;;  %v675_v4 = vld [vmem:[#allocation5 + $0x3f0] sm:$0xff]  ;;  %v674_v6 = vld [vmem:[#allocation5 + $0x3e8] sm:$0xff]  ;;  %v673_v8 = vld [vmem:[#allocation5 + $0x3e0] sm:$0xff] }
  0x8c   : > { %770 = vmatprep.subr.mxu1 %v622_v46  ;;  %700 = vmatpush1.msra.mxu0 %v557_v47  ;;  %v608_v9 = vld [vmem:[#allocation5 + $0x1d8] sm:$0xff]  ;;  %v607_v11 = vld [vmem:[#allocation5 + $0x1d0] sm:$0xff]  ;;  %v606_v13 = vld [vmem:[#allocation5 + $0x1c8] sm:$0xff] }
  0x8d   : > { %771 = vmatpush1.msra.mxu1 %v621_v48  ;;  %701 = vmatprep.subr.mxu0 %v556_v49  ;;  %v672_v10 = vld [vmem:[#allocation5 + $0x3d8] sm:$0xff]  ;;  %v671_v12 = vld [vmem:[#allocation5 + $0x3d0] sm:$0xff]  ;;  %v670_v14 = vld [vmem:[#allocation5 + $0x3c8] sm:$0xff] }
  0x8e   : > { %772 = vmatprep.subr.mxu1 %v620_v50  ;;  %702 = vmatpush1.msra.mxu0 %v555_v51  ;;  %v605_v15 = vld [vmem:[#allocation5 + $0x1c0] sm:$0xff]  ;;  %v604_v17 = vld [vmem:[#allocation5 + $0x1b8] sm:$0xff]  ;;  %v603_v19 = vld [vmem:[#allocation5 + $0x1b0] sm:$0xff] }
  0x8f   : > { %773 = vmatpush1.msra.mxu1 %v619_v52  ;;  %703 = vmatprep.subr.mxu0 %v554_v53  ;;  %v669_v16 = vld [vmem:[#allocation5 + $0x3c0] sm:$0xff]  ;;  %v668_v18 = vld [vmem:[#allocation5 + $0x3b8] sm:$0xff]  ;;  %v667_v20 = vld [vmem:[#allocation5 + $0x3b0] sm:$0xff] }
  0x90   : > { %774 = vmatprep.subr.mxu1 %v618_v54  ;;  %704 = vmatpush1.msra.mxu0 %v553_v55  ;;  %v602_v21 = vld [vmem:[#allocation5 + $0x1a8] sm:$0xff]  ;;  %v601_v23 = vld [vmem:[#allocation5 + $0x1a0] sm:$0xff]  ;;  %v600_v25 = vld [vmem:[#allocation5 + $0x198] sm:$0xff] }
  0x91   : > { %775 = vmatpush1.msra.mxu1 %v617_v56  ;;  %705 = vmatprep.subr.mxu0 %v552_v57  ;;  %v666_v22 = vld [vmem:[#allocation5 + $0x3a8] sm:$0xff]  ;;  %v665_v24 = vld [vmem:[#allocation5 + $0x3a0] sm:$0xff]  ;;  %v664_v26 = vld [vmem:[#allocation5 + $0x398] sm:$0xff] }
  0x92   : > { %776 = vmatprep.subr.mxu1 %v616_v58  ;;  %706 = vmatpush1.msra.mxu0 %v551_v59  ;;  %v599_v27 = vld [vmem:[#allocation5 + $0x190] sm:$0xff]  ;;  %v598_v29 = vld [vmem:[#allocation5 + $0x188] sm:$0xff]  ;;  %v597_v31 = vld [vmem:[#allocation5 + $0x180] sm:$0xff] }
  0x93   : > { %777 = vmatpush1.msra.mxu1 %v615_v60  ;;  %707 = vmatprep.subr.mxu0 %v550_v61  ;;  %v663_v28 = vld [vmem:[#allocation5 + $0x390] sm:$0xff]  ;;  %v662_v30 = vld [vmem:[#allocation5 + $0x388] sm:$0xff]  ;;  %v661_v32 = vld [vmem:[#allocation5 + $0x380] sm:$0xff] }
  0x94   : > { %778 = vmatprep.subr.mxu1 %v614_v62  ;;  %708 = vmatpush1.msra.mxu0 %v549_v63  ;;  %v596_v33 = vld [vmem:[#allocation5 + $0x178] sm:$0xff]  ;;  %v595_v35 = vld [vmem:[#allocation5 + $0x170] sm:$0xff]  ;;  %v594_v37 = vld [vmem:[#allocation5 + $0x168] sm:$0xff] }
  0x95   : > { %779 = vmatpush1.msra.mxu1 %v613_v0  ;;  %709 = vmatprep.subr.mxu0 %v612_v1  ;;  %v660_v34 = vld [vmem:[#allocation5 + $0x378] sm:$0xff]  ;;  %v659_v36 = vld [vmem:[#allocation5 + $0x370] sm:$0xff]  ;;  %v658_v38 = vld [vmem:[#allocation5 + $0x368] sm:$0xff] }
  0x96   : > { %780 = vmatprep.subr.mxu1 %v676_v2  ;;  %710 = vmatpush2.msra.mxu0 %v611_v3  ;;  %v593_v39 = vld [vmem:[#allocation5 + $0x160] sm:$0xff]  ;;  %v592_v41 = vld [vmem:[#allocation5 + $0x158] sm:$0xff]  ;;  %v591_v43 = vld [vmem:[#allocation5 + $0x150] sm:$0xff] }
  0x97   : > { %781 = vmatpush2.msra.mxu1 %v675_v4  ;;  %711 = vmatprep.subr.mxu0 %v610_v5  ;;  %v657_v40 = vld [vmem:[#allocation5 + $0x360] sm:$0xff]  ;;  %v656_v42 = vld [vmem:[#allocation5 + $0x358] sm:$0xff]  ;;  %v655_v44 = vld [vmem:[#allocation5 + $0x350] sm:$0xff] }
  0x98   : > { %782 = vmatprep.subr.mxu1 %v674_v6  ;;  %712 = vmatpush2.msra.mxu0 %v609_v7  ;;  %v590_v45 = vld [vmem:[#allocation5 + $0x148] sm:$0xff]  ;;  %v589_v47 = vld [vmem:[#allocation5 + $0x140] sm:$0xff]  ;;  %v588_v49 = vld [vmem:[#allocation5 + $0x138] sm:$0xff] }
  0x99   : > { %783 = vmatpush2.msra.mxu1 %v673_v8  ;;  %713 = vmatprep.subr.mxu0 %v608_v9  ;;  %v654_v46 = vld [vmem:[#allocation5 + $0x348] sm:$0xff]  ;;  %v653_v48 = vld [vmem:[#allocation5 + $0x340] sm:$0xff]  ;;  %v652_v50 = vld [vmem:[#allocation5 + $0x338] sm:$0xff] }
  0x9a   : > { %784 = vmatprep.subr.mxu1 %v672_v10  ;;  %714 = vmatpush2.msra.mxu0 %v607_v11  ;;  %v587_v51 = vld [vmem:[#allocation5 + $0x130] sm:$0xff]  ;;  %v586_v53 = vld [vmem:[#allocation5 + $0x128] sm:$0xff]  ;;  %v585_v55 = vld [vmem:[#allocation5 + $0x120] sm:$0xff] }
  0x9b   : > { %785 = vmatpush2.msra.mxu1 %v671_v12  ;;  %715 = vmatprep.subr.mxu0 %v606_v13  ;;  %v651_v52 = vld [vmem:[#allocation5 + $0x330] sm:$0xff]  ;;  %v650_v54 = vld [vmem:[#allocation5 + $0x328] sm:$0xff]  ;;  %v649_v56 = vld [vmem:[#allocation5 + $0x320] sm:$0xff] }
  0x9c   : > { %786 = vmatprep.subr.mxu1 %v670_v14  ;;  %716 = vmatpush2.msra.mxu0 %v605_v15  ;;  %v584_v57 = vld [vmem:[#allocation5 + $0x118] sm:$0xff]  ;;  %v583_v59 = vld [vmem:[#allocation5 + $0x110] sm:$0xff]  ;;  %v582_v61 = vld [vmem:[#allocation5 + $0x108] sm:$0xff] }
  0x9d   : > { %787 = vmatpush2.msra.mxu1 %v669_v16  ;;  %717 = vmatprep.subr.mxu0 %v604_v17  ;;  %v648_v58 = vld [vmem:[#allocation5 + $0x318] sm:$0xff]  ;;  %v647_v60 = vld [vmem:[#allocation5 + $0x310] sm:$0xff]  ;;  %v646_v62 = vld [vmem:[#allocation5 + $0x308] sm:$0xff] }
  0x9e   : > { %788 = vmatprep.subr.mxu1 %v668_v18  ;;  %718 = vmatpush2.msra.mxu0 %v603_v19  ;;  %v581_v63 = vld [vmem:[#allocation5 + $0x100] sm:$0xff]  ;;  %v546_v0 = vld [vmem:[%s2109_s15 + $0x8] sm:$0xff]  ;;  %v548_v2 = vld [vmem:[%s2109_s15 + $0x18] sm:$0xff] }
  0x9f   : > { %789 = vmatpush2.msra.mxu1 %v667_v20  ;;  %719 = vmatprep.subr.mxu0 %v602_v21  ;;  %v645_v1 = vld [vmem:[#allocation5 + $0x300] sm:$0xff]  ;;  %v547_v4 = vld [vmem:[%s2109_s15 + $0x10] sm:$0xff]  ;;  %v879_v7 = vld [vmem:[%s2416_s5 + $0xf0] sm:$0xff] }
  0xa0   : > { %790 = vmatprep.subr.mxu1 %v666_v22  ;;  %720 = vmatpush2.msra.mxu0 %v601_v23  ;;  %v545_v3 = vld [vmem:[%s2109_s15] sm:$0xff]  ;;  %v863_v8 = vld [vmem:[%s2416_s5 + $0x70] sm:$0xff]  ;;  %v878_v9 = vld [vmem:[%s2416_s5 + $0xe8] sm:$0xff] }
  0xa1   : > { %791 = vmatpush2.msra.mxu1 %v665_v24  ;;  %721 = vmatprep.subr.mxu0 %v600_v25  ;;  %v880_v5 = vld [vmem:[%s2416_s5 + $0xf8] sm:$0xff]  ;;  %v862_v10 = vld [vmem:[%s2416_s5 + $0x68] sm:$0xff]  ;;  %v877_v11 = vld [vmem:[%s2416_s5 + $0xe0] sm:$0xff] }
  0xa2   : > { %792 = vmatprep.subr.mxu1 %v664_v26  ;;  %722 = vmatpush2.msra.mxu0 %v599_v27  ;;  %v864_v6 = vld [vmem:[%s2416_s5 + $0x78] sm:$0xff]  ;;  %v861_v12 = vld [vmem:[%s2416_s5 + $0x60] sm:$0xff]  ;;  %v875_v15 = vld [vmem:[%s2416_s5 + $0xd0] sm:$0xff] }
  0xa3   : > { %793 = vmatpush2.msra.mxu1 %v663_v28  ;;  %723 = vmatprep.subr.mxu0 %v598_v29  ;;  %v876_v13 = vld [vmem:[%s2416_s5 + $0xd8] sm:$0xff]  ;;  %v859_v16 = vld [vmem:[%s2416_s5 + $0x50] sm:$0xff]  ;;  %v874_v17 = vld [vmem:[%s2416_s5 + $0xc8] sm:$0xff] }
  0xa4   : > { %794 = vmatprep.subr.mxu1 %v662_v30  ;;  %724 = vmatpush2.msra.mxu0 %v597_v31  ;;  %v860_v14 = vld [vmem:[%s2416_s5 + $0x58] sm:$0xff]  ;;  %v858_v18 = vld [vmem:[%s2416_s5 + $0x48] sm:$0xff]  ;;  %v873_v19 = vld [vmem:[%s2416_s5 + $0xc0] sm:$0xff] }
  0xa5   : > { %795 = vmatpush2.msra.mxu1 %v661_v32  ;;  %725 = vmatprep.subr.mxu0 %v596_v33  ;;  %v857_v20 = vld [vmem:[%s2416_s5 + $0x40] sm:$0xff]  ;;  %v872_v21 = vld [vmem:[%s2416_s5 + $0xb8] sm:$0xff]  ;;  %v871_v23 = vld [vmem:[%s2416_s5 + $0xb0] sm:$0xff] }
  0xa6   : > { %796 = vmatprep.subr.mxu1 %v660_v34  ;;  %726 = vmatpush2.msra.mxu0 %v595_v35  ;;  %v856_v22 = vld [vmem:[%s2416_s5 + $0x38] sm:$0xff]  ;;  %v855_v24 = vld [vmem:[%s2416_s5 + $0x30] sm:$0xff]  ;;  %v870_v25 = vld [vmem:[%s2416_s5 + $0xa8] sm:$0xff] }
  0xa7   : > { %797 = vmatpush2.msra.mxu1 %v659_v36  ;;  %727 = vmatprep.subr.mxu0 %v594_v37  ;;  %v854_v26 = vld [vmem:[%s2416_s5 + $0x28] sm:$0xff]  ;;  %v869_v27 = vld [vmem:[%s2416_s5 + $0xa0] sm:$0xff]  ;;  %v868_v29 = vld [vmem:[%s2416_s5 + $0x98] sm:$0xff] }
  0xa8   : > { %798 = vmatprep.subr.mxu1 %v658_v38  ;;  %728 = vmatpush2.msra.mxu0 %v593_v39  ;;  %v853_v28 = vld [vmem:[%s2416_s5 + $0x20] sm:$0xff]  ;;  %v852_v30 = vld [vmem:[%s2416_s5 + $0x18] sm:$0xff]  ;;  %v867_v31 = vld [vmem:[%s2416_s5 + $0x90] sm:$0xff]  ;;  %v1899_v39 = vmov 0  }
  0xa9   : > { %799 = vmatpush2.msra.mxu1 %v657_v40  ;;  %729 = vmatprep.subr.mxu0 %v592_v41  ;;  %v851_v32 = vld [vmem:[%s2416_s5 + $0x10] sm:$0xff]  ;;  %v866_v33 = vld [vmem:[%s2416_s5 + $0x88] sm:$0xff]  ;;  %v865_v35 = vld [vmem:[%s2416_s5 + $0x80] sm:$0xff]  ;;  %v1900_v40 = vmov 0.0  }
  0xaa   : > { %800 = vmatprep.subr.mxu1 %v656_v42  ;;  %730 = vmatpush2.msra.mxu0 %v591_v43  ;;  %v850_v34 = vld [vmem:[%s2416_s5 + $0x8] sm:$0xff]  ;;  %v849_v36 = vld [vmem:[%s2416_s5] sm:$0xff]  ;;  %v983_v38 = vld [vmem:[%s2419_s8 + $0x78] sm:$0xff] }
  0xab   : > { %801 = vmatpush2.msra.mxu1 %v655_v44  ;;  %731 = vmatprep.subr.mxu0 %v590_v45  ;;  %v1170_v37 = vld [vmem:[%s2129_s22] sm:$0xff]  ;;  %v982_v41 = vld [vmem:[%s2419_s8 + $0x70] sm:$0xff]  ;;  %v981_v42 = vld [vmem:[%s2419_s8 + $0x68] sm:$0xff] }
  0xac   : > { %802 = vmatprep.subr.mxu1 %v654_v46  ;;  %732 = vmatpush2.msra.mxu0 %v589_v47  ;;  %v980_v43 = vld [vmem:[%s2419_s8 + $0x60] sm:$0xff]  ;;  %v979_v44 = vld [vmem:[%s2419_s8 + $0x58] sm:$0xff]  ;;  %v978_v45 = vld [vmem:[%s2419_s8 + $0x50] sm:$0xff] }
  0xad   : > { %803 = vmatpush2.msra.mxu1 %v653_v48  ;;  %733 = vmatprep.subr.mxu0 %v588_v49  ;;  %v977_v46 = vld [vmem:[%s2419_s8 + $0x48] sm:$0xff]  ;;  %v976_v47 = vld [vmem:[%s2419_s8 + $0x40] sm:$0xff]  ;;  %v975_v48 = vld [vmem:[%s2419_s8 + $0x38] sm:$0xff] }
  0xae   : > { %804 = vmatprep.subr.mxu1 %v652_v50  ;;  %734 = vmatpush2.msra.mxu0 %v587_v51  ;;  %v974_v49 = vld [vmem:[%s2419_s8 + $0x30] sm:$0xff]  ;;  %v973_v50 = vld [vmem:[%s2419_s8 + $0x28] sm:$0xff]  ;;  %v821_v51 = vlaneseq }
  0xaf   : > { %805 = vmatpush2.msra.mxu1 %v651_v52  ;;  %735 = vmatprep.subr.mxu0 %v586_v53 }
  0xb0   : > { %806 = vmatprep.subr.mxu1 %v650_v54  ;;  %736 = vmatpush2.msra.mxu0 %v585_v55  ;;  %v822_v52 = vshrl.u32 %v821_v51, 7  ;;  %v819_v54 = vld [vmem:[%s2414_s3] sm:$0x3] }
  0xb1   : > { %807 = vmatpush2.msra.mxu1 %v649_v56  ;;  %737 = vmatprep.subr.mxu0 %v584_v57  ;;  %v833_v57 = vld [vmem:[#allocation7] sm:$0x3] }
  0xb2   : > { %808 = vmatprep.subr.mxu1 %v648_v58  ;;  %738 = vmatpush2.msra.mxu0 %v583_v59  ;;  %v823_v53 = vsub.s32 0, %v822_v52  ;;  %v827_v55 = vsub.s32 1, %v822_v52 }
  0xb3   : > { %809 = vmatpush2.msra.mxu1 %v647_v60  ;;  %739 = vmatprep.subr.mxu0 %v582_v61 }
  0xb4   : > { %810 = vmatprep.subr.mxu1 %v646_v62  ;;  %740 = vmatpush2.msra.mxu0 %v581_v63  ;;  %v824_v56 = vrot.slane %v819_v54, %v823_v53  ;;  %v828_v61 = vrot.slane %v819_v54, %v827_v55  ;;  %v838_v62 = vrot.slane %v833_v57, %v823_v53 }
  0xb5   : > { %741 = vmatprep.mubr.f32.mxu0 %v546_v0  ;;  %811 = vmatpush2.msra.mxu1 %v645_v1 }
  0xb6   : > { %812 = vmatprep.mubr.f32.mxu1 %v548_v2  ;;  %742 = vmatmul.mubr.f32.vlgmr.msra.gmra.mxu0 %v545_v3  ;;  %v842_v3 = vrot.slane %v833_v57, %v827_v55 }
  0xb7   : > { %813 = vmatmul.mubr.f32.vlgmr.msra.gmra.mxu1 %v547_v4  ;;  %1471 = vmatprep.subr.mxu0 %v880_v5 }
  0xb8   : > { %1472 = vmatpush3.msra.mxu0 %v864_v6  ;;  %1683 = vset.pattern.permute.xlu0 %v1899_v39 }
  0xb9   : > { %1473 = vmatprep.subr.mxu0 %v879_v7  ;;  %1534 = vmatprep.subr.mxu1 %v1900_v40 }
  0xba   : > { %1474 = vmatpush3.msra.mxu0 %v863_v8  ;;  %1172 = vperm.xlu0 %1683, %v1170_v37  }
  0xbb   : > { %1475 = vmatprep.subr.mxu0 %v878_v9  ;;  %1535 = vmatpush3.msra.mxu1 %v983_v38  ;;  %v972_v9 = vld [vmem:[%s2419_s8 + $0x20] sm:$0xff] }
  0xbc   : > { %1476 = vmatpush3.msra.mxu0 %v862_v10  ;;  %1536 = vmatprep.subr.mxu1 %v1900_v40  ;;  %v971_v10 = vld [vmem:[%s2419_s8 + $0x18] sm:$0xff]  ;;  %v1458_v38 = vld [vmem:[%s2421_s10] ss:$0 sm:$0xff] }
  0xbd   : > { %1477 = vmatprep.subr.mxu0 %v877_v11  ;;  %1537 = vmatpush3.msra.mxu1 %v982_v41  ;;  %v970_v11 = vld [vmem:[%s2419_s8 + $0x10] sm:$0xff] }
  0xbe   : > { %1478 = vmatpush3.msra.mxu0 %v861_v12  ;;  %1538 = vmatprep.subr.mxu1 %v1900_v40  ;;  %v969_v12 = vld [vmem:[%s2419_s8 + $0x8] sm:$0xff] }
  0xbf   : > { %1479 = vmatprep.subr.mxu0 %v876_v13  ;;  %1539 = vmatpush3.msra.mxu1 %v981_v42  ;;  %v1165_v13 = vstv %s1461_s26 }
  0xc0   : > { %1480 = vmatpush3.msra.mxu0 %v860_v14  ;;  %1540 = vmatprep.subr.mxu1 %v1900_v40  ;;  %v968_v14 = vld [vmem:[%s2419_s8] sm:$0xff] }
  0xc1   : > { %1481 = vmatprep.subr.mxu0 %v875_v15  ;;  %1541 = vmatpush3.msra.mxu1 %v980_v43  ;;  %v1166_v15 = vadd.s32 %v1165_v13, %v822_v52 }
  0xc2   : > { %1482 = vmatpush3.msra.mxu0 %v859_v16  ;;  %1542 = vmatprep.subr.mxu1 %v1900_v40 }
  0xc3   : > { %1483 = vmatprep.subr.mxu0 %v874_v17  ;;  %1543 = vmatpush3.msra.mxu1 %v979_v44  ;;  %v1169_v17 = vand.u32 127, %v821_v51  ;;  %vm1167_vm1 = vcmp.lt.s32.totalorder %v1166_v15, 20  ;;  %v1180_v44 = vld [vmem:[#allocation10] sm:$0x7] }
  0xc4   : > { %1484 = vmatpush3.msra.mxu0 %v858_v18  ;;  %1544 = vmatprep.subr.mxu1 %v1900_v40  ;;  %v1078_v18 = vld [vmem:[%s2422_s11 + $0x38] sm:$0xff] }
  0xc5   : > { %1485 = vmatprep.subr.mxu0 %v873_v19  ;;  %1545 = vmatpush3.msra.mxu1 %v978_v45  ;;  %v1077_v19 = vld [vmem:[%s2422_s11 + $0x30] sm:$0xff] }
  0xc6   : > { %1486 = vmatpush3.msra.mxu0 %v857_v20  ;;  %1546 = vmatprep.subr.mxu1 %v1900_v40  ;;  %v1076_v20 = vld [vmem:[%s2422_s11 + $0x28] sm:$0xff] }
  0xc7   : > { %1487 = vmatprep.subr.mxu0 %v872_v21  ;;  %1547 = vmatpush3.msra.mxu1 %v977_v46 }
  0xc8   : > { %1488 = vmatpush3.msra.mxu0 %v856_v22  ;;  %1548 = vmatprep.subr.mxu1 %v1900_v40  ;;  %v1075_v22 = vld [vmem:[%s2422_s11 + $0x20] sm:$0xff] }
  0xc9   : > { %1489 = vmatprep.subr.mxu0 %v871_v23  ;;  %1549 = vmatpush3.msra.mxu1 %v976_v47 }
  0xca   : > { %1490 = vmatpush3.msra.mxu0 %v855_v24  ;;  %1550 = vmatprep.subr.mxu1 %v1900_v40 }
  0xcb   : > { %1491 = vmatprep.subr.mxu0 %v870_v25  ;;  %1551 = vmatpush3.msra.mxu1 %v975_v48  ;;  %v1455_v25 = vld [vmem:[%s2417_s6] ss:$0 sm:$0xff] }
  0xcc   : > { %1492 = vmatpush3.msra.mxu0 %v854_v26  ;;  %1552 = vmatprep.subr.mxu1 %v1900_v40 }
  0xcd   : > { %1493 = vmatprep.subr.mxu0 %v869_v27  ;;  %1553 = vmatpush3.msra.mxu1 %v974_v49  ;;  %v1456_v27 = vld [vmem:[#allocation8] ss:$0 sm:$0xff] }
  0xce   : > { %1494 = vmatpush3.msra.mxu0 %v853_v28  ;;  %1554 = vmatprep.subr.mxu1 %v1900_v40 }
  0xcf   : > { %1495 = vmatprep.subr.mxu0 %v868_v29  ;;  %1555 = vmatpush3.msra.mxu1 %v973_v50 }
  0xd0   : > { %1496 = vmatpush3.msra.mxu0 %v852_v30  ;;  %1556 = vmatprep.subr.mxu1 %v1900_v40 }
  0xd1   : > { %1497 = vmatprep.subr.mxu0 %v867_v31  ;;  %1557 = vmatpush3.msra.mxu1 %v972_v9  ;;  %v1074_v31 = vld [vmem:[%s2422_s11 + $0x18] sm:$0xff] }
  0xd2   : > { %1498 = vmatpush3.msra.mxu0 %v851_v32  ;;  %1558 = vmatprep.subr.mxu1 %v1900_v40  ;;  %v1073_v32 = vld [vmem:[%s2422_s11 + $0x10] sm:$0xff] }
  0xd3   : > { %1499 = vmatprep.subr.mxu0 %v866_v33  ;;  %1559 = vmatpush3.msra.mxu1 %v971_v10  ;;  %v1072_v33 = vld [vmem:[%s2422_s11 + $0x8] sm:$0xff] }
  0xd4   : > { %1500 = vmatpush3.msra.mxu0 %v850_v34  ;;  %1560 = vmatprep.subr.mxu1 %v1900_v40 }
  0xd5   : > { %1501 = vmatprep.subr.mxu0 %v865_v35  ;;  %1561 = vmatpush3.msra.mxu1 %v970_v11  ;;  %v1071_v35 = vld [vmem:[%s2422_s11] sm:$0xff] }
  0xd6   : > { %1502 = vmatpush3.msra.mxu0 %v849_v36  ;;  %1562 = vmatprep.subr.mxu1 %v1900_v40  ;;  %v1457_v36 = vld [vmem:[%s2420_s9] ss:$0 sm:$0xff] }
  0xd7   : > { %1569 = vmatprep.subr.mxu0 %v1900_v40  ;;  %1563 = vmatpush3.msra.mxu1 %v969_v12 }
  0xd8   : > { %1564 = vmatprep.subr.mxu1 %v1900_v40  ;;  %1566 = vmatprep.mubr.msk.f32.mxu1 %vm1901_vm0, %v1900_v40 }
  0xd9   : > { %1565 = vmatpush3.msra.mxu1 %v968_v14 }
  0xda   : > { %1588 = vmatprep.subr.mxu1 %v1900_v40 }
 0x135   : > { %v1173_v16 = vpop.permute.xlu0 %1172 }
 0x136   : > { %vm1174_vm2 = vcmp.eq.s32.totalorder %v1173_v16, %v1169_v17 }
 0x137   : > { %vm1177_vm3 = vmand %vm1174_vm2, %vm1167_vm1 }
 0x138   : > { %v1178_v21 = vsel %vm1177_vm3, 1.0, %v1900_v40 }
 0x139   : > { %1181 = vxpose.xlu0.b32.start.end [1/1] (short) (narrow) %v1178_v21, 8 }
 0x176   : > { %v743_v58 = vpop.f32.mrf.mxu0 }
 0x177   : > { %v814_v59 = vpop.f32.mrf.mxu1 }
 0x178   : > { %v815_v60 = vadd.f32 %v814_v59, %v743_v58  ;;  %v745_v63 = vpop.f32.mrf.mxu0 }
 0x179   : > { %v816_v0 = vpop.f32.mrf.mxu1 }
 0x17a   : > { %v831_v1 = vmul.f32 %v824_v56, %v815_v60  ;;  %v817_v2 = vadd.f32 %v816_v0, %v745_v63 }
 0x17c   : > { %v832_v4 = vmul.f32 %v828_v61, %v817_v2  ;;  %v845_v5 = vadd.f32 %v838_v62, %v831_v1 }
 0x17e   : > { %v846_v6 = vadd.f32 %v842_v3, %v832_v4  ;;  %v847_v8 = vmax.f32 %v845_v5, 0.0 }
 0x180   : > { %v848_v7 = vmax.f32 %v846_v6, 0.0 }
 0x182   : > { %945 = vmatprep.mubr.f32.mxu0 %v848_v7 }
 0x183   : > { %946 = vmatmul.mubr.f32.vlgmr.msra.gmra.mxu0 %v847_v8 }
 0x184   : > { %1585 = vmatprep.mubr.msk.f32.mxu0 %vm1901_vm0, %v1900_v40  ;;  %1570 = vmatpush3.msra.mxu0 %v1078_v18 }
 0x185   : > { %1571 = vmatprep.subr.mxu0 %v1900_v40 }
 0x186   : > { %1572 = vmatpush3.msra.mxu0 %v1077_v19 }
 0x187   : > { %1573 = vmatprep.subr.mxu0 %v1900_v40 }
 0x188   : > { %1574 = vmatpush3.msra.mxu0 %v1076_v20 }
 0x189   : > { %1575 = vmatprep.subr.mxu0 %v1900_v40 }
 0x18a   : > { %1576 = vmatpush3.msra.mxu0 %v1075_v22 }
 0x18b   : > { %1577 = vmatprep.subr.mxu0 %v1900_v40 }
 0x18c   : > { %1578 = vmatpush3.msra.mxu0 %v1074_v31 }
 0x18d   : > { %1579 = vmatprep.subr.mxu0 %v1900_v40 }
 0x18e   : > { %1580 = vmatpush3.msra.mxu0 %v1073_v32 }
 0x18f   : > { %1581 = vmatprep.subr.mxu0 %v1900_v40 }
 0x190   : > { %1582 = vmatpush3.msra.mxu0 %v1072_v33 }
 0x191   : > { %1583 = vmatprep.subr.mxu0 %v1900_v40 }
 0x192   : > { %1584 = vmatpush3.msra.mxu0 %v1071_v35 }
 0x1b5   : > { %v1197_v34 = vpop.trf.xlu0 }
 0x243   : > { %v1503_v23 = vpop.f32.mrf.mxu0 }
 0x245   : > { %v1504_v24 = vpop.f32.mrf.mxu0 }
 0x246   : > { %v1505_v26 = vadd.f32 %v1504_v24, %v1503_v23 }
 0x248   : > { %v958_v28 = vmul.f32 %v1505_v26, %v1455_v25 }
 0x24a   : > { %v966_v29 = vadd.f32 %v1456_v27, %v958_v28 }
 0x24c   : > { %v967_v30 = vmax.f32 %v966_v29, 0.0 }
 0x24e   : > { %1567 = vmatmul.mubr.f32.vlgmr.msra.gmra.mxu1 %v967_v30 }
 0x24f   : > { %1589 = vmatpush3.msk.msra.mxu1 %vm1167_vm1, %v967_v30  ;;  %1590 = vmatprep.mubr.msk.f32.mxu1 %vm1901_vm0, %v1900_v40 }
 0x252   : > { %1591 = vmatmul.mubr.msk.f32.vlgmr.msra.gmra.mxu1 %vm1213_vm4, %v1197_v34 }
 0x30e   : > { %v1050_v37 = vpop.f32.mrf.mxu1 }
 0x30f   : > { %v1061_v39 = vmul.f32 %v1457_v36, %v1050_v37 }
 0x310   : > { %v1568_v41 = vpop.f32.mrf.mxu1 }
 0x311   : > { %v1069_v42 = vadd.f32 %v1458_v38, %v1061_v39 }
 0x312   : > { %v1283_v40 = vpop.f32.mrf.mxu1 }
 0x313   : > { %v1070_v43 = vmax.f32 %v1069_v42, 0.0  ;;  %v1287_v45 = vadd.f32 %v1283_v40, %v1180_v44 }
 0x314   : > { %v1592_v46 = vpop.f32.mrf.mxu1 }
 0x315   : > { %1586 = vmatmul.mubr.msk.f32.vlgmr.msra.gmra.mxu0 %vm1086_vm5, %v1070_v43  ;;  %1288 = vst [vmem:[#allocation10] sm:$0x7] %v1287_v45 }
 0x316   : > { %1803 = shalt.err (!%p1800_p13)
}
 0x317   : > { %p2463_p4 = pmov %p2462_p3  ;;  %v1459_v47 = vld [vmem:[%s2423_s12] ss:$0 sm:$0xff]  ;;  %s1466_s20 = sshll.u32 %s2000_s17, 7  ;;  %vm1160_vm6 = vcmask 261120  }
 0x318   : > { %s1314_s15 = sshll.u32 %s2131_s24, 4  ;;  %s2464_s19 = sld [smem:[#allocation26_spill]]  ;;  %s1315_s15 = int_to_ptr.vmem [resolvable:$true] %s1314_s15 }
 0x319   : > { %1608 = dma.vmem_to_hbm [thread:$0]  (%p2463_p4), %s1302_s29, 64, %s2424_s13, [#allocation4]  }
 0x31a   : > { %s1290_s14 = scalar_lea.sflag [#allocation12], %s2105_s7  ;;  %s1814_s23 = scalar_lea.vmem %s1315_s15, 128 }
 0x31b   : > { %p1815_p9 = scmp.ne.s32.totalorder %s1315_s15, %s1814_s23  ;;  %p2465_p1 = scmp.ne.s32.totalorder %s2453_s27, 0 }
 0x31c   : > { %s1903_s29 = smov [#allocation11]  }
 0x31d   : > { %p1816_p11 = pnand %p1815_p9, %p2465_p1  ;;  %s1818_s28 = sshll.u32 %s1903_s29, 4  ;;  %s1819_s28 = int_to_ptr.vmem [resolvable:$false] %s1818_s28 }
 0x31e   : > { %s2370_s21 = scalar_lea.hbm %s2464_s19, %s1466_s20  ;;  %s1820_s26 = scalar_lea.vmem %s1819_s28, 256 }
 0x31f   : > { %p1817_p12 = pneg %p1816_p11  ;;  %p1821_p0 = scmp.lt.s32.totalorder %s1315_s15, %s1819_s28 }
 0x320   : > { %p1822_p5 = scmp.lt.s32.totalorder %s1820_s26, %s1814_s23 }
 0x322   : > { %p1823_p3 = por %p1822_p5, %p1821_p0 }
 0x324   : > { %p1824_p8 = pnand %p1823_p3, %p1817_p12 }
 0x3d5   : > { %v1156_v48 = vpop.f32.mrf.mxu0 }
 0x3d6   : > { %v1157_v49 = vadd.f32 %v1459_v47, %v1156_v48 }
 0x3d7   : > { %v1587_v50 = vpop.f32.mrf.mxu0 }
 0x3d8   : > { %1161 = vst.msk [vmem:[%s2131_s24] sm:$0xff] %vm1160_vm6, %v1157_v49 }
 0x3d9   : > { %1827 = shalt.err (!%p1824_p8)
}
 0x3da   : > { %s1828_s24 = scalar_lea.hbm %s2370_s21, 128  ;;  %s1832_s22 = scalar_lea.hbm %s2464_s19, 384 }
 0x3db   : > { %p1829_p7 = scmp.ne.s32.totalorder %s2370_s21, %s1828_s24  ;;  %p1833_p6 = scmp.lt.s32.totalorder %s2370_s21, %s2464_s19 }
 0x3dc   : > { %p1834_p13 = scmp.lt.s32.totalorder %s1832_s22, %s1828_s24 }
 0x3dd   : > { %p1830_p10 = pnand %p1829_p7, %p2465_p1 }
 0x3de   : > { %p1835_p4 = por %p1834_p13, %p1833_p6 }
 0x3df   : > { %p1831_p2 = pneg %p1830_p10 }
 0x3e1   : > { %p1836_p9 = pnand %p1835_p4, %p1831_p2 }
 0x3e3   : > { %1839 = shalt.err (!%p1836_p9)
}
 0x3e4   : > { %1609 = dma.vmem_to_hbm [thread:$0]  (%p2465_p1), %s1315_s15, 128, %s2370_s21, %s1290_s14  }
 0x3e5   : > { %p2466_p11 = scmp.eq.s32.totalorder %s2000_s17, 2 }
 0x3e7   : > { %1869 = dma.done.wait (%p2466_p11), [#allocation4], 64   ;;  %p2467_p12 = pmov %p2466_p11 }
 0x3e9   : > { %1871 = vsyncadd (%p2467_p12), [#allocation4], 4294967232 }
 0x3ea PF: > { %s2468_s2 = sld [smem:[#allocation18_spill]]  ;;  %p1640_p0 = scmp.ge.s32.totalorder %s1890_s16, 2 }
 0x3eb   : > { %s2469_s4 = sld [smem:[#allocation20_spill]] }
 0x3f0   : > { %s1330_s23 = sand.u32 1, %s2468_s2  }
 0x3f1   : > { %p2470_p5 = scmp.ne.s32.totalorder %s2469_s4, 0  ;;  %s1331_s29 = scalar_lea.sflag [#allocation12], %s1330_s23 }
 0x3f3   : > { %p1628_p3 = pnand %p1640_p0, %p2470_p5 }
 0x3f5   : > { %p1629_p8 = pneg %p1628_p3 }
 0x3f7   : > { %1873 = dma.done.wait (%p1629_p8), %s1331_s29, 128  }
 0x3f8   : > { %1875 = vsyncadd (%p1629_p8), %s1331_s29, 4294967168  ;;  %s2471_s16 = sld [smem:[#allocation21_spill]]  ;;  %s2474_s29 = smov %s1882_s30 }
 0x3f9   : > { %s2472_s27 = sld [smem:[#allocation19_spill]] }
 0x3fa   : > { %s2473_s15 = sld [smem:[#allocation22_spill]] }
 0x3fe   : > { %p31_p1 = scmp.ge.s32.totalorder %s2471_s16, 5  }
 0x3ff   : > { %s2475_s30 = smov %s2472_s27 }
 0x400   :  { %33 = sbr.rel (!%p31_p1) target bundleno = 13 (0xd), region = 145 }
 0x405   :  { %1336 = vsyncpa [#allocation3], 1 }
 0x406   :  { %1338 = vsyncpa [#allocation3 + $0x1], 1 }
 0x407   :  { %1339 = vsyncpa [#allocation6], 1 }
 0x408   :  { %1340 = vsyncpa [#allocation9], 1 }
 0x409   :  { %1341 = vsyncpa [#allocation4], 1 }
 0x40a   :  { %1343 = vsyncpa [#allocation4 + $0x1], 1 }
 0x40b   :  { %1344 = vsyncpa [#allocation12], 1 }
 0x40c   :  { %1346 = vsyncpa [#allocation12 + $0x1], 1 }

</bundles_post_ra>
